<compile_context>
chip_gen: v7x
topology: tpu7x:2x2x1
jax: 0.10.0
libtpu: 0.0.40
codegen_flags: <defaults>
</compile_context>

<pallas_src>
import functools

import jax
import jax.numpy as jnp
from jax.experimental import pallas as pl
from jax.experimental.pallas import tpu as pltpu


def _round_up(x, m):
    return (x + m - 1) // m * m


def _vmem_bytes(t_block, b_pad, h_pad):
    """Rough per-call VMEM footprint (double-buffered streams + resident)."""
    gx_block = t_block * b_pad * 4 * h_pad * 4      # gates_x input block
    hs_block = t_block * b_pad * h_pad * 4          # h_seq output block
    whh = h_pad * 4 * h_pad * 4                     # recurrent weight
    state = 4 * b_pad * h_pad * 4                   # h0, c0, h_out, c_out
    return 2 * (gx_block + hs_block) + 2 * whh + 2 * state


def _lstm_recurrent_kernel(gx_ref, whh_ref, h0_ref, c0_ref,
                           h_seq_ref, h_out_ref, c_out_ref,
                           *, t_block, seq_len, hidden_pad, needs_mask):
    """One grid step == t_block LSTM time steps.

    gx_ref    : (t_block, B_pad, 4*H_pad)  precomputed x @ W_ih^T + b (per-gate padded)
    whh_ref   : (H_pad, 4*H_pad)           recurrent weight (per-gate padded)
    h_seq_ref : (t_block, B_pad, H_pad)    hidden states emitted for this chunk
    h_out_ref / c_out_ref : (B_pad, H_pad) final state; doubles as the carry
                                           (constant index_map -> VMEM-resident)
    """
    chunk = pl.program_id(0)
    Hp = hidden_pad

    # Initialize the carry (the resident output blocks) at the first chunk.
    @pl.when(chunk == 0)
    def _():
        h_out_ref[...] = h0_ref[...]
        c_out_ref[...] = c0_ref[...]

    # Load the recurrent weight once per grid step (outside the unrolled loop)
    # so the MXU RHS push is hoisted and stays latched across time steps.
    whh = whh_ref[...]

    def step(t, carry):
        h, c = carry                                         # vreg-resident carry

        # Only the recurrent half of the gate pre-activation is computed here;
        # the x-projection + bias was hoisted into a batched GEMM outside.
        gates = (jnp.dot(h, whh, preferred_element_type=jnp.float32)
                 + gx_ref[t])                                # (B_pad, 4*H_pad)

        # PyTorch gate order i, f, g, o; each slab is 128-lane aligned.
        i_g = jax.nn.sigmoid(gates[:, 0 * Hp:1 * Hp])
        f_g = jax.nn.sigmoid(gates[:, 1 * Hp:2 * Hp])
        g_g = jnp.tanh(gates[:, 2 * Hp:3 * Hp])
        o_g = jax.nn.sigmoid(gates[:, 3 * Hp:4 * Hp])

        c_new = f_g * c + i_g * g_g
        h_new = o_g * jnp.tanh(c_new)

        if needs_mask:
            # Only emitted when S % t_block != 0 (tail-chunk padding).
            valid = (chunk * t_block + t) < seq_len
            h_new = jnp.where(valid, h_new, h)
            c_new = jnp.where(valid, c_new, c)

        h_seq_ref[t] = h_new
        return (h_new, c_new)

    h_fin, c_fin = jax.lax.fori_loop(
        0, t_block, step, (h_out_ref[...], c_out_ref[...]), unroll=True)

    # Write the carried state back once per chunk (not per step).
    h_out_ref[...] = h_fin
    c_out_ref[...] = c_fin


def decoder_rnn_pallas(tokens, h0, c0, params, *, t_block=None):
    """Forward pass matching DecoderRNN.forward.

    tokens: (B, S) int32
    h0, c0: (1, B, H) float32
    returns: logits (B, S, V) float32, (h_T (1,B,H), c_T (1,B,H))
    """
    B, S = tokens.shape
    H = params["w_hh_t"].shape[0]
    V = params["w_out_t"].shape[1]

    H_pad = _round_up(H, 128)      # lane alignment per gate
    B_pad = _round_up(B, 8)        # sublane alignment

    if t_block is None:
        t_block = min(S, 64)       # amortize per-grid-step overhead
    # Shrink t_block so the working set fits comfortably in VMEM (v7x: 64 MiB).
    while _vmem_bytes(t_block, B_pad, H_pad) > (40 << 20) and t_block > 8:
        t_block = max(8, t_block // 2)
    needs_mask = (S % t_block) != 0
    S_pad = _round_up(S, t_block)
    n_chunks = S_pad // t_block
    vmem_limit = int(min(60 << 20,
                         max(16 << 20, _vmem_bytes(t_block, B_pad, H_pad) + (4 << 20))))

    # ---- per-gate padding folded into the (small) weights ----
    w_ih_p = jnp.pad(params["w_ih_t"].reshape(H, 4, H),
                     ((0, 0), (0, 0), (0, H_pad - H))).reshape(H, 4 * H_pad)
    b_p = jnp.pad(params["b_gates"].reshape(1, 4, H),
                  ((0, 0), (0, 0), (0, H_pad - H))).reshape(1, 4 * H_pad)
    w_hh_p = jnp.pad(params["w_hh_t"].reshape(H, 4, H),
                     ((0, H_pad - H), (0, 0), (0, H_pad - H))).reshape(H_pad, 4 * H_pad)
    w_out_p = jnp.pad(params["w_out_t"], ((0, H_pad - H), (0, 0)))        # (H_pad, V)

    # ---- glue + hoisted input projection (one big GEMM, no sequential dep) ----
    # Time-major tokens so the GEMM output is already in kernel layout.
    tokens_p = jnp.pad(tokens, ((0, B_pad - B), (0, 0)))                  # (B_pad, S)
    tokens_tm = tokens_p.T                                                # (S, B_pad), tiny
    x = jnp.maximum(params["embedding"][tokens_tm], 0.0)                  # (S, B_pad, H)
    gates_x = (x.reshape(S * B_pad, H) @ w_ih_p + b_p)                    # (S*B_pad, 4*H_pad)
    gates_x = gates_x.reshape(S, B_pad, 4 * H_pad)
    if S_pad != S:
        gates_x = jnp.pad(gates_x, ((0, S_pad - S), (0, 0), (0, 0)))

    h0_p = jnp.pad(h0[0], ((0, B_pad - B), (0, H_pad - H)))
    c0_p = jnp.pad(c0[0], ((0, B_pad - B), (0, H_pad - H)))

    kernel = functools.partial(_lstm_recurrent_kernel,
                               t_block=t_block, seq_len=S, hidden_pad=H_pad,
                               needs_mask=needs_mask)

    grid_spec = pltpu.PrefetchScalarGridSpec(
        num_scalar_prefetch=0,
        grid=(n_chunks,),
        in_specs=[
            pl.BlockSpec((t_block, B_pad, 4 * H_pad), lambda i: (i, 0, 0)),  # gates_x chunk
            pl.BlockSpec((H_pad, 4 * H_pad), lambda i: (0, 0)),              # W_hh^T
            pl.BlockSpec((B_pad, H_pad), lambda i: (0, 0)),                  # h0
            pl.BlockSpec((B_pad, H_pad), lambda i: (0, 0)),                  # c0
        ],
        out_specs=[
            pl.BlockSpec((t_block, B_pad, H_pad), lambda i: (i, 0, 0)),      # h sequence
            pl.BlockSpec((B_pad, H_pad), lambda i: (0, 0)),                  # h_T (carry)
            pl.BlockSpec((B_pad, H_pad), lambda i: (0, 0)),                  # c_T (carry)
        ],
    )

    h_seq_p, h_T_p, c_T_p = pl.pallas_call(
        kernel,
        out_shape=(
            jax.ShapeDtypeStruct((S_pad, B_pad, H_pad), jnp.float32),
            jax.ShapeDtypeStruct((B_pad, H_pad), jnp.float32),
            jax.ShapeDtypeStruct((B_pad, H_pad), jnp.float32),
        ),
        grid_spec=grid_spec,
        compiler_params=pltpu.CompilerParams(
            dimension_semantics=("arbitrary",),   # serial recurrence over time
            vmem_limit_bytes=vmem_limit,
        ),
    )(gates_x, w_hh_p, h0_p, c0_p)

    # ---- hoisted output projection: one MXU-efficient GEMM over the padded slab ----
    # (w_out rows zero-padded to H_pad so no strided slice of h_seq is needed.)
    logits_p = (h_seq_p.reshape(S_pad * B_pad, H_pad) @ w_out_p
                + params["b_out"]).reshape(S_pad, B_pad, V)
    logits = jnp.transpose(logits_p[:S, :B], (1, 0, 2))                   # (B, S, V)

    h_T = h_T_p[:B, :H][None]
    c_T = c_T_p[:B, :H][None]
    return logits, (h_T, c_T)


def init_params(key, hidden_size, output_size):
    """Deterministic parameter init matching the module's __init__ shapes."""
    ks = jax.random.split(key, 7)
    H, V = hidden_size, output_size
    scale = 0.1
    embedding = scale * jax.random.normal(ks[0], (V, H), jnp.float32)
    w_ih = scale * jax.random.normal(ks[1], (4 * H, H), jnp.float32)   # torch weight_ih_l0
    w_hh = scale * jax.random.normal(ks[2], (4 * H, H), jnp.float32)   # torch weight_hh_l0
    b_ih = scale * jax.random.normal(ks[3], (4 * H,), jnp.float32)
    b_hh = scale * jax.random.normal(ks[4], (4 * H,), jnp.float32)
    w_out = scale * jax.random.normal(ks[5], (V, H), jnp.float32)      # nn.Linear weight
    b_out = scale * jax.random.normal(ks[6], (V,), jnp.float32)
    return {
        "embedding": embedding,
        "w_ih_t": w_ih.T,                      # (H, 4H)
        "w_hh_t": w_hh.T,                      # (H, 4H)
        "b_gates": (b_ih + b_hh)[None, :],     # (1, 4H)
        "w_out_t": w_out.T,                    # (H, V)
        "b_out": b_out[None, :],               # (1, V)
    }


def reference_forward(tokens, h0, c0, params):
    """Pure-JAX reference of DecoderRNN.forward for validation."""
    emb = jnp.maximum(params["embedding"][tokens], 0.0)    # (B, S, H)
    H = params["w_hh_t"].shape[0]

    def step(carry, x_t):
        h, c = carry
        gates = x_t @ params["w_ih_t"] + h @ params["w_hh_t"] + params["b_gates"]
        i = jax.nn.sigmoid(gates[:, 0 * H:1 * H])
        f = jax.nn.sigmoid(gates[:, 1 * H:2 * H])
        g = jnp.tanh(gates[:, 2 * H:3 * H])
        o = jax.nn.sigmoid(gates[:, 3 * H:4 * H])
        c_new = f * c + i * g
        h_new = o * jnp.tanh(c_new)
        out = h_new @ params["w_out_t"] + params["b_out"]
        return (h_new, c_new), out

    (h_t, c_t), outs = jax.lax.scan(step, (h0[0], c0[0]),
                                    jnp.transpose(emb, (1, 0, 2)))
    return jnp.transpose(outs, (1, 0, 2)), (h_t[None], c_t[None])


def _check(B, S, H, V, seed, t_block=None):
    key = jax.random.PRNGKey(seed)
    k_params, k_tokens = jax.random.split(key)
    params = init_params(k_params, H, V)
    tokens = jax.random.randint(k_tokens, (B, S), 0, V, dtype=jnp.int32)
    h0 = jnp.zeros((1, B, H), jnp.float32)
    c0 = jnp.zeros((1, B, H), jnp.float32)

    fwd = jax.jit(functools.partial(decoder_rnn_pallas, t_block=t_block))
    logits, (h_t, c_t) = fwd(tokens, h0, c0, params)
    jax.block_until_ready((logits, h_t, c_t))

    ref_logits, (ref_h, ref_c) = reference_forward(tokens, h0, c0, params)
    assert jnp.allclose(logits, ref_logits, atol=1e-4, rtol=1e-4)
    assert jnp.allclose(h_t, ref_h, atol=1e-4, rtol=1e-4)
    assert jnp.allclose(c_t, ref_c, atol=1e-4, rtol=1e-4)


if __name__ == "__main__":
    # batch=2, seq_len=8, hidden_size=32, output_size=64 (single-chunk, no mask)
    _check(B=2, S=8, H=32, V=64, seed=0)
    # multi-chunk + tail-masked path (carry across grid steps, S % t_block != 0)
    _check(B=3, S=10, H=32, V=48, seed=0, t_block=4)
    print("KERNEL_OK")
</pallas_src>

<mosaic_0001>
module attributes {stable_mosaic.version = 11 : i64} {
  func.func @_lstm_recurrent_kernel(%arg0: i32, %arg1: memref<8x8x512xf32, #tpu.memory_space<vmem>>, %arg2: memref<128x512xf32, #tpu.memory_space<vmem>>, %arg3: memref<8x128xf32, #tpu.memory_space<vmem>>, %arg4: memref<8x128xf32, #tpu.memory_space<vmem>>, %arg5: memref<8x8x128xf32, #tpu.memory_space<vmem>>, %arg6: memref<8x128xf32, #tpu.memory_space<vmem>>, %arg7: memref<8x128xf32, #tpu.memory_space<vmem>>) attributes {dimension_semantics = [#tpu.dimension_semantics<arbitrary>], iteration_bounds = array<i64: 1>, scalar_prefetch = 0 : i64, scratch_operands = 0 : i64, tpu.core_type = #tpu.core_type<tc>, window_params = [{transform_indices = @transform_0, window_bounds = array<i64: 8, 8, 512>}, {pipeline_mode = #tpu.pipeline_mode<synchronous>, transform_indices = @transform_1, window_bounds = array<i64: 128, 512>}, {pipeline_mode = #tpu.pipeline_mode<synchronous>, transform_indices = @transform_2, window_bounds = array<i64: 8, 128>}, {pipeline_mode = #tpu.pipeline_mode<synchronous>, transform_indices = @transform_3, window_bounds = array<i64: 8, 128>}, {transform_indices = @transform_4, window_bounds = array<i64: 8, 8, 128>}, {pipeline_mode = #tpu.pipeline_mode<synchronous>, transform_indices = @transform_5, window_bounds = array<i64: 8, 128>}, {pipeline_mode = #tpu.pipeline_mode<synchronous>, transform_indices = @transform_6, window_bounds = array<i64: 8, 128>}]} {
    %c0_i32 = arith.constant 0 : i32
    %0 = arith.cmpi eq, %arg0, %c0_i32 : i32
    %1 = arith.extui %0 : i1 to i32
    %c0_i32_0 = arith.constant 0 : i32
    %2 = arith.cmpi ne, %1, %c0_i32_0 : i32
    scf.if %2 {
      %c0_74 = arith.constant 0 : index
      %c0_75 = arith.constant 0 : index
      %280 = vector.load %arg3[%c0_74, %c0_75] : memref<8x128xf32, #tpu.memory_space<vmem>>, vector<8x128xf32>
      %c0_76 = arith.constant 0 : index
      %c0_77 = arith.constant 0 : index
      %281 = vector.load %arg6[%c0_76, %c0_77] : memref<8x128xf32, #tpu.memory_space<vmem>>, vector<8x128xf32>
      tpu.vector_store %arg6[%c0_76, %c0_77], %280 {strides = array<i32>} : memref<8x128xf32, #tpu.memory_space<vmem>>, vector<8x128xf32>,
      %c0_78 = arith.constant 0 : index
      %c0_79 = arith.constant 0 : index
      %282 = vector.load %arg4[%c0_78, %c0_79] : memref<8x128xf32, #tpu.memory_space<vmem>>, vector<8x128xf32>
      %c0_80 = arith.constant 0 : index
      %c0_81 = arith.constant 0 : index
      %283 = vector.load %arg7[%c0_80, %c0_81] : memref<8x128xf32, #tpu.memory_space<vmem>>, vector<8x128xf32>
      tpu.vector_store %arg7[%c0_80, %c0_81], %282 {strides = array<i32>} : memref<8x128xf32, #tpu.memory_space<vmem>>, vector<8x128xf32>,
    } else {
    }
    %c0 = arith.constant 0 : index
    %c0_1 = arith.constant 0 : index
    %3 = vector.load %arg2[%c0, %c0_1] : memref<128x512xf32, #tpu.memory_space<vmem>>, vector<128x512xf32>
    %c0_2 = arith.constant 0 : index
    %c0_3 = arith.constant 0 : index
    %4 = vector.load %arg6[%c0_2, %c0_3] : memref<8x128xf32, #tpu.memory_space<vmem>>, vector<8x128xf32>
    %c0_4 = arith.constant 0 : index
    %c0_5 = arith.constant 0 : index
    %5 = vector.load %arg7[%c0_4, %c0_5] : memref<8x128xf32, #tpu.memory_space<vmem>>, vector<8x128xf32>
    %c0_i32_6 = arith.constant 0 : i32
    %cst = arith.constant dense<0.000000e+00> : vector<8x512xf32>
    %6 = tpu.matmul %4, %3, %cst {dimension_numbers = #tpu.dot_dimension_numbers<[1], [0], [0], [1], [0, 0, 1, 1], [], []>} : vector<8x128xf32>, vector<128x512xf32>, vector<8x512xf32> -> vector<8x512xf32>
    %7 = arith.index_cast %c0_i32_6 : i32 to index
    %c0_7 = arith.constant 0 : index
    %c0_8 = arith.constant 0 : index
    %8 = vector.load %arg1[%7, %c0_7, %c0_8] : memref<8x8x512xf32, #tpu.memory_space<vmem>>, vector<1x8x512xf32>
    %9 = vector.shape_cast %8 : vector<1x8x512xf32> to vector<8x512xf32>
    %10 = arith.addf %6, %9 : vector<8x512xf32>
    %11 = vector.extract_strided_slice %10 {offsets = [0, 0], sizes = [8, 128], strides = [1, 1]} : vector<8x512xf32> to vector<8x128xf32>
    %12 = arith.negf %11 : vector<8x128xf32>
    %13 = math.exp %12 : vector<8x128xf32>
    %cst_9 = arith.constant 1.000000e+00 : f32
    %14 = vector.broadcast %cst_9 : f32 to vector<8x128xf32>
    %15 = arith.addf %14, %13 : vector<8x128xf32>
    %16 = arith.divf %14, %15 : vector<8x128xf32>
    %17 = vector.extract_strided_slice %10 {offsets = [0, 128], sizes = [8, 128], strides = [1, 1]} : vector<8x512xf32> to vector<8x128xf32>
    %18 = arith.negf %17 : vector<8x128xf32>
    %19 = math.exp %18 : vector<8x128xf32>
    %cst_10 = arith.constant 1.000000e+00 : f32
    %20 = vector.broadcast %cst_10 : f32 to vector<8x128xf32>
    %21 = arith.addf %20, %19 : vector<8x128xf32>
    %22 = arith.divf %20, %21 : vector<8x128xf32>
    %23 = vector.extract_strided_slice %10 {offsets = [0, 256], sizes = [8, 128], strides = [1, 1]} : vector<8x512xf32> to vector<8x128xf32>
    %24 = math.tanh %23 : vector<8x128xf32>
    %25 = vector.extract_strided_slice %10 {offsets = [0, 384], sizes = [8, 128], strides = [1, 1]} : vector<8x512xf32> to vector<8x128xf32>
    %26 = arith.negf %25 : vector<8x128xf32>
    %27 = math.exp %26 : vector<8x128xf32>
    %cst_11 = arith.constant 1.000000e+00 : f32
    %28 = vector.broadcast %cst_11 : f32 to vector<8x128xf32>
    %29 = arith.addf %28, %27 : vector<8x128xf32>
    %30 = arith.divf %28, %29 : vector<8x128xf32>
    %31 = arith.mulf %22, %5 : vector<8x128xf32>
    %32 = arith.mulf %16, %24 : vector<8x128xf32>
    %33 = arith.addf %31, %32 : vector<8x128xf32>
    %34 = math.tanh %33 : vector<8x128xf32>
    %35 = arith.mulf %30, %34 : vector<8x128xf32>
    %36 = arith.index_cast %c0_i32_6 : i32 to index
    %c0_12 = arith.constant 0 : index
    %c0_13 = arith.constant 0 : index
    %37 = vector.load %arg5[%36, %c0_12, %c0_13] : memref<8x8x128xf32, #tpu.memory_space<vmem>>, vector<1x8x128xf32>
    %38 = vector.shape_cast %37 : vector<1x8x128xf32> to vector<8x128xf32>
    %39 = vector.shape_cast %35 : vector<8x128xf32> to vector<1x8x128xf32>
    tpu.vector_store %arg5[%36, %c0_12, %c0_13], %39 {strides = array<i32>} : memref<8x8x128xf32, #tpu.memory_space<vmem>>, vector<1x8x128xf32>,
    %c1_i32 = arith.constant 1 : i32
    %cst_14 = arith.constant dense<0.000000e+00> : vector<8x512xf32>
    %40 = tpu.matmul %35, %3, %cst_14 {dimension_numbers = #tpu.dot_dimension_numbers<[1], [0], [0], [1], [0, 0, 1, 1], [], []>} : vector<8x128xf32>, vector<128x512xf32>, vector<8x512xf32> -> vector<8x512xf32>
    %41 = arith.index_cast %c1_i32 : i32 to index
    %c0_15 = arith.constant 0 : index
    %c0_16 = arith.constant 0 : index
    %42 = vector.load %arg1[%41, %c0_15, %c0_16] : memref<8x8x512xf32, #tpu.memory_space<vmem>>, vector<1x8x512xf32>
    %43 = vector.shape_cast %42 : vector<1x8x512xf32> to vector<8x512xf32>
    %44 = arith.addf %40, %43 : vector<8x512xf32>
    %45 = vector.extract_strided_slice %44 {offsets = [0, 0], sizes = [8, 128], strides = [1, 1]} : vector<8x512xf32> to vector<8x128xf32>
    %46 = arith.negf %45 : vector<8x128xf32>
    %47 = math.exp %46 : vector<8x128xf32>
    %cst_17 = arith.constant 1.000000e+00 : f32
    %48 = vector.broadcast %cst_17 : f32 to vector<8x128xf32>
    %49 = arith.addf %48, %47 : vector<8x128xf32>
    %50 = arith.divf %48, %49 : vector<8x128xf32>
    %51 = vector.extract_strided_slice %44 {offsets = [0, 128], sizes = [8, 128], strides = [1, 1]} : vector<8x512xf32> to vector<8x128xf32>
    %52 = arith.negf %51 : vector<8x128xf32>
    %53 = math.exp %52 : vector<8x128xf32>
    %cst_18 = arith.constant 1.000000e+00 : f32
    %54 = vector.broadcast %cst_18 : f32 to vector<8x128xf32>
    %55 = arith.addf %54, %53 : vector<8x128xf32>
    %56 = arith.divf %54, %55 : vector<8x128xf32>
    %57 = vector.extract_strided_slice %44 {offsets = [0, 256], sizes = [8, 128], strides = [1, 1]} : vector<8x512xf32> to vector<8x128xf32>
    %58 = math.tanh %57 : vector<8x128xf32>
    %59 = vector.extract_strided_slice %44 {offsets = [0, 384], sizes = [8, 128], strides = [1, 1]} : vector<8x512xf32> to vector<8x128xf32>
    %60 = arith.negf %59 : vector<8x128xf32>
    %61 = math.exp %60 : vector<8x128xf32>
    %cst_19 = arith.constant 1.000000e+00 : f32
    %62 = vector.broadcast %cst_19 : f32 to vector<8x128xf32>
    %63 = arith.addf %62, %61 : vector<8x128xf32>
    %64 = arith.divf %62, %63 : vector<8x128xf32>
    %65 = arith.mulf %56, %33 : vector<8x128xf32>
    %66 = arith.mulf %50, %58 : vector<8x128xf32>
    %67 = arith.addf %65, %66 : vector<8x128xf32>
    %68 = math.tanh %67 : vector<8x128xf32>
    %69 = arith.mulf %64, %68 : vector<8x128xf32>
    %70 = arith.index_cast %c1_i32 : i32 to index
    %c0_20 = arith.constant 0 : index
    %c0_21 = arith.constant 0 : index
    %71 = vector.load %arg5[%70, %c0_20, %c0_21] : memref<8x8x128xf32, #tpu.memory_space<vmem>>, vector<1x8x128xf32>
    %72 = vector.shape_cast %71 : vector<1x8x128xf32> to vector<8x128xf32>
    %73 = vector.shape_cast %69 : vector<8x128xf32> to vector<1x8x128xf32>
    tpu.vector_store %arg5[%70, %c0_20, %c0_21], %73 {strides = array<i32>} : memref<8x8x128xf32, #tpu.memory_space<vmem>>, vector<1x8x128xf32>,
    %c2_i32 = arith.constant 2 : i32
    %cst_22 = arith.constant dense<0.000000e+00> : vector<8x512xf32>
    %74 = tpu.matmul %69, %3, %cst_22 {dimension_numbers = #tpu.dot_dimension_numbers<[1], [0], [0], [1], [0, 0, 1, 1], [], []>} : vector<8x128xf32>, vector<128x512xf32>, vector<8x512xf32> -> vector<8x512xf32>
    %75 = arith.index_cast %c2_i32 : i32 to index
    %c0_23 = arith.constant 0 : index
    %c0_24 = arith.constant 0 : index
    %76 = vector.load %arg1[%75, %c0_23, %c0_24] : memref<8x8x512xf32, #tpu.memory_space<vmem>>, vector<1x8x512xf32>
    %77 = vector.shape_cast %76 : vector<1x8x512xf32> to vector<8x512xf32>
    %78 = arith.addf %74, %77 : vector<8x512xf32>
    %79 = vector.extract_strided_slice %78 {offsets = [0, 0], sizes = [8, 128], strides = [1, 1]} : vector<8x512xf32> to vector<8x128xf32>
    %80 = arith.negf %79 : vector<8x128xf32>
    %81 = math.exp %80 : vector<8x128xf32>
    %cst_25 = arith.constant 1.000000e+00 : f32
    %82 = vector.broadcast %cst_25 : f32 to vector<8x128xf32>
    %83 = arith.addf %82, %81 : vector<8x128xf32>
    %84 = arith.divf %82, %83 : vector<8x128xf32>
    %85 = vector.extract_strided_slice %78 {offsets = [0, 128], sizes = [8, 128], strides = [1, 1]} : vector<8x512xf32> to vector<8x128xf32>
    %86 = arith.negf %85 : vector<8x128xf32>
    %87 = math.exp %86 : vector<8x128xf32>
    %cst_26 = arith.constant 1.000000e+00 : f32
    %88 = vector.broadcast %cst_26 : f32 to vector<8x128xf32>
    %89 = arith.addf %88, %87 : vector<8x128xf32>
    %90 = arith.divf %88, %89 : vector<8x128xf32>
    %91 = vector.extract_strided_slice %78 {offsets = [0, 256], sizes = [8, 128], strides = [1, 1]} : vector<8x512xf32> to vector<8x128xf32>
    %92 = math.tanh %91 : vector<8x128xf32>
    %93 = vector.extract_strided_slice %78 {offsets = [0, 384], sizes = [8, 128], strides = [1, 1]} : vector<8x512xf32> to vector<8x128xf32>
    %94 = arith.negf %93 : vector<8x128xf32>
    %95 = math.exp %94 : vector<8x128xf32>
    %cst_27 = arith.constant 1.000000e+00 : f32
    %96 = vector.broadcast %cst_27 : f32 to vector<8x128xf32>
    %97 = arith.addf %96, %95 : vector<8x128xf32>
    %98 = arith.divf %96, %97 : vector<8x128xf32>
    %99 = arith.mulf %90, %67 : vector<8x128xf32>
    %100 = arith.mulf %84, %92 : vector<8x128xf32>
    %101 = arith.addf %99, %100 : vector<8x128xf32>
    %102 = math.tanh %101 : vector<8x128xf32>
    %103 = arith.mulf %98, %102 : vector<8x128xf32>
    %104 = arith.index_cast %c2_i32 : i32 to index
    %c0_28 = arith.constant 0 : index
    %c0_29 = arith.constant 0 : index
    %105 = vector.load %arg5[%104, %c0_28, %c0_29] : memref<8x8x128xf32, #tpu.memory_space<vmem>>, vector<1x8x128xf32>
    %106 = vector.shape_cast %105 : vector<1x8x128xf32> to vector<8x128xf32>
    %107 = vector.shape_cast %103 : vector<8x128xf32> to vector<1x8x128xf32>
    tpu.vector_store %arg5[%104, %c0_28, %c0_29], %107 {strides = array<i32>} : memref<8x8x128xf32, #tpu.memory_space<vmem>>, vector<1x8x128xf32>,
    %c3_i32 = arith.constant 3 : i32
    %cst_30 = arith.constant dense<0.000000e+00> : vector<8x512xf32>
    %108 = tpu.matmul %103, %3, %cst_30 {dimension_numbers = #tpu.dot_dimension_numbers<[1], [0], [0], [1], [0, 0, 1, 1], [], []>} : vector<8x128xf32>, vector<128x512xf32>, vector<8x512xf32> -> vector<8x512xf32>
    %109 = arith.index_cast %c3_i32 : i32 to index
    %c0_31 = arith.constant 0 : index
    %c0_32 = arith.constant 0 : index
    %110 = vector.load %arg1[%109, %c0_31, %c0_32] : memref<8x8x512xf32, #tpu.memory_space<vmem>>, vector<1x8x512xf32>
    %111 = vector.shape_cast %110 : vector<1x8x512xf32> to vector<8x512xf32>
    %112 = arith.addf %108, %111 : vector<8x512xf32>
    %113 = vector.extract_strided_slice %112 {offsets = [0, 0], sizes = [8, 128], strides = [1, 1]} : vector<8x512xf32> to vector<8x128xf32>
    %114 = arith.negf %113 : vector<8x128xf32>
    %115 = math.exp %114 : vector<8x128xf32>
    %cst_33 = arith.constant 1.000000e+00 : f32
    %116 = vector.broadcast %cst_33 : f32 to vector<8x128xf32>
    %117 = arith.addf %116, %115 : vector<8x128xf32>
    %118 = arith.divf %116, %117 : vector<8x128xf32>
    %119 = vector.extract_strided_slice %112 {offsets = [0, 128], sizes = [8, 128], strides = [1, 1]} : vector<8x512xf32> to vector<8x128xf32>
    %120 = arith.negf %119 : vector<8x128xf32>
    %121 = math.exp %120 : vector<8x128xf32>
    %cst_34 = arith.constant 1.000000e+00 : f32
    %122 = vector.broadcast %cst_34 : f32 to vector<8x128xf32>
    %123 = arith.addf %122, %121 : vector<8x128xf32>
    %124 = arith.divf %122, %123 : vector<8x128xf32>
    %125 = vector.extract_strided_slice %112 {offsets = [0, 256], sizes = [8, 128], strides = [1, 1]} : vector<8x512xf32> to vector<8x128xf32>
    %126 = math.tanh %125 : vector<8x128xf32>
    %127 = vector.extract_strided_slice %112 {offsets = [0, 384], sizes = [8, 128], strides = [1, 1]} : vector<8x512xf32> to vector<8x128xf32>
    %128 = arith.negf %127 : vector<8x128xf32>
    %129 = math.exp %128 : vector<8x128xf32>
    %cst_35 = arith.constant 1.000000e+00 : f32
    %130 = vector.broadcast %cst_35 : f32 to vector<8x128xf32>
    %131 = arith.addf %130, %129 : vector<8x128xf32>
    %132 = arith.divf %130, %131 : vector<8x128xf32>
    %133 = arith.mulf %124, %101 : vector<8x128xf32>
    %134 = arith.mulf %118, %126 : vector<8x128xf32>
    %135 = arith.addf %133, %134 : vector<8x128xf32>
    %136 = math.tanh %135 : vector<8x128xf32>
    %137 = arith.mulf %132, %136 : vector<8x128xf32>
    %138 = arith.index_cast %c3_i32 : i32 to index
    %c0_36 = arith.constant 0 : index
    %c0_37 = arith.constant 0 : index
    %139 = vector.load %arg5[%138, %c0_36, %c0_37] : memref<8x8x128xf32, #tpu.memory_space<vmem>>, vector<1x8x128xf32>
    %140 = vector.shape_cast %139 : vector<1x8x128xf32> to vector<8x128xf32>
    %141 = vector.shape_cast %137 : vector<8x128xf32> to vector<1x8x128xf32>
    tpu.vector_store %arg5[%138, %c0_36, %c0_37], %141 {strides = array<i32>} : memref<8x8x128xf32, #tpu.memory_space<vmem>>, vector<1x8x128xf32>,
    %c4_i32 = arith.constant 4 : i32
    %cst_38 = arith.constant dense<0.000000e+00> : vector<8x512xf32>
    %142 = tpu.matmul %137, %3, %cst_38 {dimension_numbers = #tpu.dot_dimension_numbers<[1], [0], [0], [1], [0, 0, 1, 1], [], []>} : vector<8x128xf32>, vector<128x512xf32>, vector<8x512xf32> -> vector<8x512xf32>
    %143 = arith.index_cast %c4_i32 : i32 to index
    %c0_39 = arith.constant 0 : index
    %c0_40 = arith.constant 0 : index
    %144 = vector.load %arg1[%143, %c0_39, %c0_40] : memref<8x8x512xf32, #tpu.memory_space<vmem>>, vector<1x8x512xf32>
    %145 = vector.shape_cast %144 : vector<1x8x512xf32> to vector<8x512xf32>
    %146 = arith.addf %142, %145 : vector<8x512xf32>
    %147 = vector.extract_strided_slice %146 {offsets = [0, 0], sizes = [8, 128], strides = [1, 1]} : vector<8x512xf32> to vector<8x128xf32>
    %148 = arith.negf %147 : vector<8x128xf32>
    %149 = math.exp %148 : vector<8x128xf32>
    %cst_41 = arith.constant 1.000000e+00 : f32
    %150 = vector.broadcast %cst_41 : f32 to vector<8x128xf32>
    %151 = arith.addf %150, %149 : vector<8x128xf32>
    %152 = arith.divf %150, %151 : vector<8x128xf32>
    %153 = vector.extract_strided_slice %146 {offsets = [0, 128], sizes = [8, 128], strides = [1, 1]} : vector<8x512xf32> to vector<8x128xf32>
    %154 = arith.negf %153 : vector<8x128xf32>
    %155 = math.exp %154 : vector<8x128xf32>
    %cst_42 = arith.constant 1.000000e+00 : f32
    %156 = vector.broadcast %cst_42 : f32 to vector<8x128xf32>
    %157 = arith.addf %156, %155 : vector<8x128xf32>
    %158 = arith.divf %156, %157 : vector<8x128xf32>
    %159 = vector.extract_strided_slice %146 {offsets = [0, 256], sizes = [8, 128], strides = [1, 1]} : vector<8x512xf32> to vector<8x128xf32>
    %160 = math.tanh %159 : vector<8x128xf32>
    %161 = vector.extract_strided_slice %146 {offsets = [0, 384], sizes = [8, 128], strides = [1, 1]} : vector<8x512xf32> to vector<8x128xf32>
    %162 = arith.negf %161 : vector<8x128xf32>
    %163 = math.exp %162 : vector<8x128xf32>
    %cst_43 = arith.constant 1.000000e+00 : f32
    %164 = vector.broadcast %cst_43 : f32 to vector<8x128xf32>
    %165 = arith.addf %164, %163 : vector<8x128xf32>
    %166 = arith.divf %164, %165 : vector<8x128xf32>
    %167 = arith.mulf %158, %135 : vector<8x128xf32>
    %168 = arith.mulf %152, %160 : vector<8x128xf32>
    %169 = arith.addf %167, %168 : vector<8x128xf32>
    %170 = math.tanh %169 : vector<8x128xf32>
    %171 = arith.mulf %166, %170 : vector<8x128xf32>
    %172 = arith.index_cast %c4_i32 : i32 to index
    %c0_44 = arith.constant 0 : index
    %c0_45 = arith.constant 0 : index
    %173 = vector.load %arg5[%172, %c0_44, %c0_45] : memref<8x8x128xf32, #tpu.memory_space<vmem>>, vector<1x8x128xf32>
    %174 = vector.shape_cast %173 : vector<1x8x128xf32> to vector<8x128xf32>
    %175 = vector.shape_cast %171 : vector<8x128xf32> to vector<1x8x128xf32>
    tpu.vector_store %arg5[%172, %c0_44, %c0_45], %175 {strides = array<i32>} : memref<8x8x128xf32, #tpu.memory_space<vmem>>, vector<1x8x128xf32>,
    %c5_i32 = arith.constant 5 : i32
    %cst_46 = arith.constant dense<0.000000e+00> : vector<8x512xf32>
    %176 = tpu.matmul %171, %3, %cst_46 {dimension_numbers = #tpu.dot_dimension_numbers<[1], [0], [0], [1], [0, 0, 1, 1], [], []>} : vector<8x128xf32>, vector<128x512xf32>, vector<8x512xf32> -> vector<8x512xf32>
    %177 = arith.index_cast %c5_i32 : i32 to index
    %c0_47 = arith.constant 0 : index
    %c0_48 = arith.constant 0 : index
    %178 = vector.load %arg1[%177, %c0_47, %c0_48] : memref<8x8x512xf32, #tpu.memory_space<vmem>>, vector<1x8x512xf32>
    %179 = vector.shape_cast %178 : vector<1x8x512xf32> to vector<8x512xf32>
    %180 = arith.addf %176, %179 : vector<8x512xf32>
    %181 = vector.extract_strided_slice %180 {offsets = [0, 0], sizes = [8, 128], strides = [1, 1]} : vector<8x512xf32> to vector<8x128xf32>
    %182 = arith.negf %181 : vector<8x128xf32>
    %183 = math.exp %182 : vector<8x128xf32>
    %cst_49 = arith.constant 1.000000e+00 : f32
    %184 = vector.broadcast %cst_49 : f32 to vector<8x128xf32>
    %185 = arith.addf %184, %183 : vector<8x128xf32>
    %186 = arith.divf %184, %185 : vector<8x128xf32>
    %187 = vector.extract_strided_slice %180 {offsets = [0, 128], sizes = [8, 128], strides = [1, 1]} : vector<8x512xf32> to vector<8x128xf32>
    %188 = arith.negf %187 : vector<8x128xf32>
    %189 = math.exp %188 : vector<8x128xf32>
    %cst_50 = arith.constant 1.000000e+00 : f32
    %190 = vector.broadcast %cst_50 : f32 to vector<8x128xf32>
    %191 = arith.addf %190, %189 : vector<8x128xf32>
    %192 = arith.divf %190, %191 : vector<8x128xf32>
    %193 = vector.extract_strided_slice %180 {offsets = [0, 256], sizes = [8, 128], strides = [1, 1]} : vector<8x512xf32> to vector<8x128xf32>
    %194 = math.tanh %193 : vector<8x128xf32>
    %195 = vector.extract_strided_slice %180 {offsets = [0, 384], sizes = [8, 128], strides = [1, 1]} : vector<8x512xf32> to vector<8x128xf32>
    %196 = arith.negf %195 : vector<8x128xf32>
    %197 = math.exp %196 : vector<8x128xf32>
    %cst_51 = arith.constant 1.000000e+00 : f32
    %198 = vector.broadcast %cst_51 : f32 to vector<8x128xf32>
    %199 = arith.addf %198, %197 : vector<8x128xf32>
    %200 = arith.divf %198, %199 : vector<8x128xf32>
    %201 = arith.mulf %192, %169 : vector<8x128xf32>
    %202 = arith.mulf %186, %194 : vector<8x128xf32>
    %203 = arith.addf %201, %202 : vector<8x128xf32>
    %204 = math.tanh %203 : vector<8x128xf32>
    %205 = arith.mulf %200, %204 : vector<8x128xf32>
    %206 = arith.index_cast %c5_i32 : i32 to index
    %c0_52 = arith.constant 0 : index
    %c0_53 = arith.constant 0 : index
    %207 = vector.load %arg5[%206, %c0_52, %c0_53] : memref<8x8x128xf32, #tpu.memory_space<vmem>>, vector<1x8x128xf32>
    %208 = vector.shape_cast %207 : vector<1x8x128xf32> to vector<8x128xf32>
    %209 = vector.shape_cast %205 : vector<8x128xf32> to vector<1x8x128xf32>
    tpu.vector_store %arg5[%206, %c0_52, %c0_53], %209 {strides = array<i32>} : memref<8x8x128xf32, #tpu.memory_space<vmem>>, vector<1x8x128xf32>,
    %c6_i32 = arith.constant 6 : i32
    %cst_54 = arith.constant dense<0.000000e+00> : vector<8x512xf32>
    %210 = tpu.matmul %205, %3, %cst_54 {dimension_numbers = #tpu.dot_dimension_numbers<[1], [0], [0], [1], [0, 0, 1, 1], [], []>} : vector<8x128xf32>, vector<128x512xf32>, vector<8x512xf32> -> vector<8x512xf32>
    %211 = arith.index_cast %c6_i32 : i32 to index
    %c0_55 = arith.constant 0 : index
    %c0_56 = arith.constant 0 : index
    %212 = vector.load %arg1[%211, %c0_55, %c0_56] : memref<8x8x512xf32, #tpu.memory_space<vmem>>, vector<1x8x512xf32>
    %213 = vector.shape_cast %212 : vector<1x8x512xf32> to vector<8x512xf32>
    %214 = arith.addf %210, %213 : vector<8x512xf32>
    %215 = vector.extract_strided_slice %214 {offsets = [0, 0], sizes = [8, 128], strides = [1, 1]} : vector<8x512xf32> to vector<8x128xf32>
    %216 = arith.negf %215 : vector<8x128xf32>
    %217 = math.exp %216 : vector<8x128xf32>
    %cst_57 = arith.constant 1.000000e+00 : f32
    %218 = vector.broadcast %cst_57 : f32 to vector<8x128xf32>
    %219 = arith.addf %218, %217 : vector<8x128xf32>
    %220 = arith.divf %218, %219 : vector<8x128xf32>
    %221 = vector.extract_strided_slice %214 {offsets = [0, 128], sizes = [8, 128], strides = [1, 1]} : vector<8x512xf32> to vector<8x128xf32>
    %222 = arith.negf %221 : vector<8x128xf32>
    %223 = math.exp %222 : vector<8x128xf32>
    %cst_58 = arith.constant 1.000000e+00 : f32
    %224 = vector.broadcast %cst_58 : f32 to vector<8x128xf32>
    %225 = arith.addf %224, %223 : vector<8x128xf32>
    %226 = arith.divf %224, %225 : vector<8x128xf32>
    %227 = vector.extract_strided_slice %214 {offsets = [0, 256], sizes = [8, 128], strides = [1, 1]} : vector<8x512xf32> to vector<8x128xf32>
    %228 = math.tanh %227 : vector<8x128xf32>
    %229 = vector.extract_strided_slice %214 {offsets = [0, 384], sizes = [8, 128], strides = [1, 1]} : vector<8x512xf32> to vector<8x128xf32>
    %230 = arith.negf %229 : vector<8x128xf32>
    %231 = math.exp %230 : vector<8x128xf32>
    %cst_59 = arith.constant 1.000000e+00 : f32
    %232 = vector.broadcast %cst_59 : f32 to vector<8x128xf32>
    %233 = arith.addf %232, %231 : vector<8x128xf32>
    %234 = arith.divf %232, %233 : vector<8x128xf32>
    %235 = arith.mulf %226, %203 : vector<8x128xf32>
    %236 = arith.mulf %220, %228 : vector<8x128xf32>
    %237 = arith.addf %235, %236 : vector<8x128xf32>
    %238 = math.tanh %237 : vector<8x128xf32>
    %239 = arith.mulf %234, %238 : vector<8x128xf32>
    %240 = arith.index_cast %c6_i32 : i32 to index
    %c0_60 = arith.constant 0 : index
    %c0_61 = arith.constant 0 : index
    %241 = vector.load %arg5[%240, %c0_60, %c0_61] : memref<8x8x128xf32, #tpu.memory_space<vmem>>, vector<1x8x128xf32>
    %242 = vector.shape_cast %241 : vector<1x8x128xf32> to vector<8x128xf32>
    %243 = vector.shape_cast %239 : vector<8x128xf32> to vector<1x8x128xf32>
    tpu.vector_store %arg5[%240, %c0_60, %c0_61], %243 {strides = array<i32>} : memref<8x8x128xf32, #tpu.memory_space<vmem>>, vector<1x8x128xf32>,
    %c7_i32 = arith.constant 7 : i32
    %cst_62 = arith.constant dense<0.000000e+00> : vector<8x512xf32>
    %244 = tpu.matmul %239, %3, %cst_62 {dimension_numbers = #tpu.dot_dimension_numbers<[1], [0], [0], [1], [0, 0, 1, 1], [], []>} : vector<8x128xf32>, vector<128x512xf32>, vector<8x512xf32> -> vector<8x512xf32>
    %245 = arith.index_cast %c7_i32 : i32 to index
    %c0_63 = arith.constant 0 : index
    %c0_64 = arith.constant 0 : index
    %246 = vector.load %arg1[%245, %c0_63, %c0_64] : memref<8x8x512xf32, #tpu.memory_space<vmem>>, vector<1x8x512xf32>
    %247 = vector.shape_cast %246 : vector<1x8x512xf32> to vector<8x512xf32>
    %248 = arith.addf %244, %247 : vector<8x512xf32>
    %249 = vector.extract_strided_slice %248 {offsets = [0, 0], sizes = [8, 128], strides = [1, 1]} : vector<8x512xf32> to vector<8x128xf32>
    %250 = arith.negf %249 : vector<8x128xf32>
    %251 = math.exp %250 : vector<8x128xf32>
    %cst_65 = arith.constant 1.000000e+00 : f32
    %252 = vector.broadcast %cst_65 : f32 to vector<8x128xf32>
    %253 = arith.addf %252, %251 : vector<8x128xf32>
    %254 = arith.divf %252, %253 : vector<8x128xf32>
    %255 = vector.extract_strided_slice %248 {offsets = [0, 128], sizes = [8, 128], strides = [1, 1]} : vector<8x512xf32> to vector<8x128xf32>
    %256 = arith.negf %255 : vector<8x128xf32>
    %257 = math.exp %256 : vector<8x128xf32>
    %cst_66 = arith.constant 1.000000e+00 : f32
    %258 = vector.broadcast %cst_66 : f32 to vector<8x128xf32>
    %259 = arith.addf %258, %257 : vector<8x128xf32>
    %260 = arith.divf %258, %259 : vector<8x128xf32>
    %261 = vector.extract_strided_slice %248 {offsets = [0, 256], sizes = [8, 128], strides = [1, 1]} : vector<8x512xf32> to vector<8x128xf32>
    %262 = math.tanh %261 : vector<8x128xf32>
    %263 = vector.extract_strided_slice %248 {offsets = [0, 384], sizes = [8, 128], strides = [1, 1]} : vector<8x512xf32> to vector<8x128xf32>
    %264 = arith.negf %263 : vector<8x128xf32>
    %265 = math.exp %264 : vector<8x128xf32>
    %cst_67 = arith.constant 1.000000e+00 : f32
    %266 = vector.broadcast %cst_67 : f32 to vector<8x128xf32>
    %267 = arith.addf %266, %265 : vector<8x128xf32>
    %268 = arith.divf %266, %267 : vector<8x128xf32>
    %269 = arith.mulf %260, %237 : vector<8x128xf32>
    %270 = arith.mulf %254, %262 : vector<8x128xf32>
    %271 = arith.addf %269, %270 : vector<8x128xf32>
    %272 = math.tanh %271 : vector<8x128xf32>
    %273 = arith.mulf %268, %272 : vector<8x128xf32>
    %274 = arith.index_cast %c7_i32 : i32 to index
    %c0_68 = arith.constant 0 : index
    %c0_69 = arith.constant 0 : index
    %275 = vector.load %arg5[%274, %c0_68, %c0_69] : memref<8x8x128xf32, #tpu.memory_space<vmem>>, vector<1x8x128xf32>
    %276 = vector.shape_cast %275 : vector<1x8x128xf32> to vector<8x128xf32>
    %277 = vector.shape_cast %273 : vector<8x128xf32> to vector<1x8x128xf32>
    tpu.vector_store %arg5[%274, %c0_68, %c0_69], %277 {strides = array<i32>} : memref<8x8x128xf32, #tpu.memory_space<vmem>>, vector<1x8x128xf32>,
    %c8_i32 = arith.constant 8 : i32
    %c0_70 = arith.constant 0 : index
    %c0_71 = arith.constant 0 : index
    %278 = vector.load %arg6[%c0_70, %c0_71] : memref<8x128xf32, #tpu.memory_space<vmem>>, vector<8x128xf32>
    tpu.vector_store %arg6[%c0_70, %c0_71], %273 {strides = array<i32>} : memref<8x128xf32, #tpu.memory_space<vmem>>, vector<8x128xf32>,
    %c0_72 = arith.constant 0 : index
    %c0_73 = arith.constant 0 : index
    %279 = vector.load %arg7[%c0_72, %c0_73] : memref<8x128xf32, #tpu.memory_space<vmem>>, vector<8x128xf32>
    tpu.vector_store %arg7[%c0_72, %c0_73], %271 {strides = array<i32>} : memref<8x128xf32, #tpu.memory_space<vmem>>, vector<8x128xf32>,
    return
  }
  func.func @transform_0(%arg0: i32) -> (i32, i32, i32) {
    %c0_i32 = arith.constant 0 : i32
    %c0_i32_0 = arith.constant 0 : i32
    %c0_i32_1 = arith.constant 0 : i32
    return %arg0, %c0_i32, %c0_i32_0 : i32, i32, i32
  }
  func.func @transform_1(%arg0: i32) -> (i32, i32) {
    %c0_i32 = arith.constant 0 : i32
    %c0_i32_0 = arith.constant 0 : i32
    %c0_i32_1 = arith.constant 0 : i32
    return %c0_i32, %c0_i32_0 : i32, i32
  }
  func.func @transform_2(%arg0: i32) -> (i32, i32) {
    %c0_i32 = arith.constant 0 : i32
    %c0_i32_0 = arith.constant 0 : i32
    %c0_i32_1 = arith.constant 0 : i32
    return %c0_i32, %c0_i32_0 : i32, i32
  }
  func.func @transform_3(%arg0: i32) -> (i32, i32) {
    %c0_i32 = arith.constant 0 : i32
    %c0_i32_0 = arith.constant 0 : i32
    %c0_i32_1 = arith.constant 0 : i32
    return %c0_i32, %c0_i32_0 : i32, i32
  }
  func.func @transform_4(%arg0: i32) -> (i32, i32, i32) {
    %c0_i32 = arith.constant 0 : i32
    %c0_i32_0 = arith.constant 0 : i32
    %c0_i32_1 = arith.constant 0 : i32
    return %arg0, %c0_i32, %c0_i32_0 : i32, i32, i32
  }
  func.func @transform_5(%arg0: i32) -> (i32, i32) {
    %c0_i32 = arith.constant 0 : i32
    %c0_i32_0 = arith.constant 0 : i32
    %c0_i32_1 = arith.constant 0 : i32
    return %c0_i32, %c0_i32_0 : i32, i32
  }
  func.func @transform_6(%arg0: i32) -> (i32, i32) {
    %c0_i32 = arith.constant 0 : i32
    %c0_i32_0 = arith.constant 0 : i32
    %c0_i32_1 = arith.constant 0 : i32
    return %c0_i32, %c0_i32_0 : i32, i32
  }
}

</mosaic_0001>

<bundles_post_ra>
// kernel: decoder_rnn_pallas.1
= control target key start
LH: loop header
LB: loop body
LE: loop exit
PB: predicated region body
PF: predicated region fallthrough
CT: control target
= control target key end

     0   :  { %v2190_v3 = vmov 0.0   ;;  %s2910_s1 = inlined_call_operand.vmem [shape: f32[128,512], index: 1, kind: input, shape index: {}]   ;;  %s2911_s2 = inlined_call_operand.vmem [shape: f32[8,128], index: 2, kind: input, shape index: {}]   ;;  %s2912_s0 = inlined_call_operand.vmem [shape: f32[8,8,512], index: 0, kind: input, shape index: {}]   ;;  %s2913_s3 = inlined_call_operand.vmem [shape: f32[8,128], index: 3, kind: input, shape index: {}]   ;;  %s2914_s4 = inlined_call_operand.vmem [shape: f32[8,8,128], index: 4, kind: output, shape index: {0}]   ;;  %s2915_s6 = inlined_call_operand.vmem [shape: f32[8,128], index: 6, kind: output, shape index: {2}]   ;;  %s2916_s5 = inlined_call_operand.vmem [shape: f32[8,128], index: 5, kind: output, shape index: {1}]  }
   0x1   :  { %v29_v0 = vld [vmem:[%s2910_s1 + $0x8] sm:$0xff]  ;;  %v28_v2 = vld [vmem:[%s2910_s1] sm:$0xff]  ;;  %162 = vmatprep.mubr.f32.mxu0 %v2190_v3  ;;  %233 = vmatprep.mubr.f32.mxu1 %v2190_v3  ;;  %v31_v19 = vld [vmem:[%s2910_s1 + $0x18] sm:$0xff] }
   0x2   :  { %v33_v1 = vld [vmem:[%s2910_s1 + $0x28] sm:$0xff]  ;;  %v32_v5 = vld [vmem:[%s2910_s1 + $0x20] sm:$0xff]  ;;  %v35_v20 = vld [vmem:[%s2910_s1 + $0x38] sm:$0xff] }
   0x3   :  { %v2237_v4 = vpack.c.bf16 %v33_v1, %v29_v0  ;;  %v37_v6 = vld [vmem:[%s2910_s1 + $0x48] sm:$0xff]  ;;  %v2248_v8 = vpack.c.bf16 %v32_v5, %v28_v2  ;;  %v36_v10 = vld [vmem:[%s2910_s1 + $0x40] sm:$0xff]  ;;  %v2289_v22 = vpack.c.bf16 %v35_v20, %v31_v19  ;;  %v30_v23 = vld [vmem:[%s2910_s1 + $0x10] sm:$0xff] }
   0x4   :  { %v41_v7 = vld [vmem:[%s2910_s1 + $0x68] sm:$0xff]  ;;  %v40_v11 = vld [vmem:[%s2910_s1 + $0x60] sm:$0xff]  ;;  %v34_v24 = vld [vmem:[%s2910_s1 + $0x30] sm:$0xff] }
   0x5   :  { %v2250_v9 = vpack.c.bf16 %v41_v7, %v37_v6  ;;  %v45_v12 = vld [vmem:[%s2910_s1 + $0x88] sm:$0xff]  ;;  %1550 = vmatprep.subr.bf16.mxu0 %v2237_v4  ;;  %v2266_v14 = vpack.c.bf16 %v40_v11, %v36_v10  ;;  %v44_v15 = vld [vmem:[%s2910_s1 + $0x80] sm:$0xff]  ;;  %v2297_v25 = vpack.c.bf16 %v34_v24, %v30_v23  ;;  %1582 = vmatprep.subr.bf16.mxu1 %v2289_v22  ;;  %v39_v27 = vld [vmem:[%s2910_s1 + $0x58] sm:$0xff] }
   0x6   :  { %v49_v13 = vld [vmem:[%s2910_s1 + $0xa8] sm:$0xff]  ;;  %1552 = vmatpush1.bf16.msra.mxu0 %v2248_v8  ;;  %v48_v16 = vld [vmem:[%s2910_s1 + $0xa0] sm:$0xff]  ;;  %v43_v28 = vld [vmem:[%s2910_s1 + $0x78] sm:$0xff] }
   0x7   :  { %1554 = vmatprep.subr.bf16.mxu0 %v2250_v9  ;;  %v2275_v17 = vpack.c.bf16 %v49_v13, %v45_v12  ;;  %v53_v18 = vld [vmem:[%s2910_s1 + $0xc8] sm:$0xff]  ;;  %v2300_v26 = vpack.c.bf16 %v48_v16, %v44_v15  ;;  %v38_v29 = vld [vmem:[%s2910_s1 + $0x50] sm:$0xff]  ;;  %v52_v31 = vld [vmem:[%s2910_s1 + $0xc0] sm:$0xff]  ;;  %1584 = vmatpush1.bf16.msra.mxu1 %v2297_v25  ;;  %v2322_v33 = vpack.c.bf16 %v43_v28, %v39_v27 }
   0x8   :  { %v57_v21 = vld [vmem:[%s2910_s1 + $0xe8] sm:$0xff]  ;;  %v56_v32 = vld [vmem:[%s2910_s1 + $0xe0] sm:$0xff]  ;;  %v42_v34 = vld [vmem:[%s2910_s1 + $0x70] sm:$0xff] }
   0x9   :  { %v2313_v30 = vpack.c.bf16 %v57_v21, %v53_v18  ;;  %v61_v35 = vld [vmem:[%s2910_s1 + $0x108] sm:$0xff]  ;;  %v2333_v37 = vpack.c.bf16 %v42_v34, %v38_v29  ;;  %v47_v38 = vld [vmem:[%s2910_s1 + $0x98] sm:$0xff]  ;;  %1586 = vmatprep.subr.bf16.mxu1 %v2322_v33  ;;  %v46_v40 = vld [vmem:[%s2910_s1 + $0x90] sm:$0xff]  ;;  %v2349_v42 = vpack.c.bf16 %v56_v32, %v52_v31 }
   0xa   :  { %1556 = vmatpush1.bf16.msra.mxu0 %v2266_v14  ;;  %v65_v36 = vld [vmem:[%s2910_s1 + $0x128] sm:$0xff]  ;;  %v51_v39 = vld [vmem:[%s2910_s1 + $0xb8] sm:$0xff]  ;;  %v50_v41 = vld [vmem:[%s2910_s1 + $0xb0] sm:$0xff] }
   0xb   :  { %1558 = vmatprep.subr.bf16.mxu0 %v2275_v17  ;;  %v60_v43 = vld [vmem:[%s2910_s1 + $0x100] sm:$0xff]  ;;  %v2357_v45 = vpack.c.bf16 %v51_v39, %v47_v38  ;;  %v2360_v46 = vpack.c.bf16 %v65_v36, %v61_v35  ;;  %1588 = vmatpush1.bf16.msra.mxu1 %v2333_v37  ;;  %v69_v47 = vld [vmem:[%s2910_s1 + $0x148] sm:$0xff]  ;;  %v2366_v48 = vpack.c.bf16 %v50_v41, %v46_v40  ;;  %v55_v49 = vld [vmem:[%s2910_s1 + $0xd8] sm:$0xff] }
   0xc   :  { %v64_v44 = vld [vmem:[%s2910_s1 + $0x120] sm:$0xff]  ;;  %v59_v50 = vld [vmem:[%s2910_s1 + $0xf8] sm:$0xff]  ;;  %v73_v51 = vld [vmem:[%s2910_s1 + $0x168] sm:$0xff] }
   0xd   :  { %1590 = vmatprep.subr.bf16.mxu1 %v2357_v45  ;;  %v2378_v52 = vpack.c.bf16 %v59_v50, %v55_v49  ;;  %v54_v53 = vld [vmem:[%s2910_s1 + $0xd0] sm:$0xff]  ;;  %v2387_v55 = vpack.c.bf16 %v64_v44, %v60_v43  ;;  %v63_v56 = vld [vmem:[%s2910_s1 + $0x118] sm:$0xff]  ;;  %v2396_v58 = vpack.c.bf16 %v73_v51, %v69_v47  ;;  %v68_v59 = vld [vmem:[%s2910_s1 + $0x140] sm:$0xff] }
   0xe   :  { %1560 = vmatpush1.bf16.msra.mxu0 %v2300_v26  ;;  %v58_v54 = vld [vmem:[%s2910_s1 + $0xf0] sm:$0xff]  ;;  %v67_v57 = vld [vmem:[%s2910_s1 + $0x138] sm:$0xff]  ;;  %v72_v60 = vld [vmem:[%s2910_s1 + $0x160] sm:$0xff] }
   0xf   :  { %1562 = vmatprep.subr.bf16.mxu0 %v2313_v30  ;;  %1592 = vmatpush1.bf16.msra.mxu1 %v2366_v48  ;;  %v77_v61 = vld [vmem:[%s2910_s1 + $0x188] sm:$0xff]  ;;  %v2408_v62 = vpack.c.bf16 %v58_v54, %v54_v53  ;;  %v2414_v0 = vpack.c.bf16 %v67_v57, %v63_v56  ;;  %v62_v1 = vld [vmem:[%s2910_s1 + $0x110] sm:$0xff]  ;;  %v71_v5 = vld [vmem:[%s2910_s1 + $0x158] sm:$0xff]  ;;  %v2429_v7 = vpack.c.bf16 %v72_v60, %v68_v59 }
  0x10   :  { %v81_v63 = vld [vmem:[%s2910_s1 + $0x1a8] sm:$0xff]  ;;  %1594 = vmatprep.subr.bf16.mxu1 %v2378_v52  ;;  %v66_v2 = vld [vmem:[%s2910_s1 + $0x130] sm:$0xff]  ;;  %v75_v6 = vld [vmem:[%s2910_s1 + $0x178] sm:$0xff] }
  0x11   :  { %v2432_v10 = vpack.c.bf16 %v81_v63, %v77_v61  ;;  %v76_v11 = vld [vmem:[%s2910_s1 + $0x180] sm:$0xff]  ;;  %v85_v13 = vld [vmem:[%s2910_s1 + $0x1c8] sm:$0xff]  ;;  %v2444_v15 = vpack.c.bf16 %v66_v2, %v62_v1  ;;  %v2450_v18 = vpack.c.bf16 %v75_v6, %v71_v5  ;;  %v70_v19 = vld [vmem:[%s2910_s1 + $0x150] sm:$0xff] }
  0x12   :  { %1564 = vmatpush1.bf16.msra.mxu0 %v2349_v42  ;;  %v80_v12 = vld [vmem:[%s2910_s1 + $0x1a0] sm:$0xff]  ;;  %v89_v16 = vld [vmem:[%s2910_s1 + $0x1e8] sm:$0xff]  ;;  %v74_v20 = vld [vmem:[%s2910_s1 + $0x170] sm:$0xff] }
  0x13   :  { %1566 = vmatprep.subr.bf16.mxu0 %v2360_v46  ;;  %1596 = vmatpush1.bf16.msra.mxu1 %v2408_v62  ;;  %v79_v21 = vld [vmem:[%s2910_s1 + $0x198] sm:$0xff]  ;;  %v2465_v24 = vpack.c.bf16 %v80_v12, %v76_v11  ;;  %v2468_v27 = vpack.c.bf16 %v89_v16, %v85_v13  ;;  %v84_v28 = vld [vmem:[%s2910_s1 + $0x1c0] sm:$0xff]  ;;  %v2477_v31 = vpack.c.bf16 %v74_v20, %v70_v19  ;;  %v78_v34 = vld [vmem:[%s2910_s1 + $0x190] sm:$0xff] }
  0x14   :  { %1598 = vmatprep.subr.bf16.mxu1 %v2414_v0  ;;  %v83_v23 = vld [vmem:[%s2910_s1 + $0x1b8] sm:$0xff]  ;;  %v88_v29 = vld [vmem:[%s2910_s1 + $0x1e0] sm:$0xff]  ;;  %v82_v35 = vld [vmem:[%s2910_s1 + $0x1b0] sm:$0xff] }
  0x15   :  { %v2480_v32 = vpack.c.bf16 %v83_v23, %v79_v21  ;;  %v87_v36 = vld [vmem:[%s2910_s1 + $0x1d8] sm:$0xff]  ;;  %v2495_v39 = vpack.c.bf16 %v88_v29, %v84_v28  ;;  %v2499_v40 = vpack.c.bf16 %v82_v35, %v78_v34  ;;  %v86_v43 = vld [vmem:[%s2910_s1 + $0x1d0] sm:$0xff]  ;;  %v24_v47 = vld [vmem:[%s2911_s2] sm:$0xff] }
  0x16   :  { %1568 = vmatpush1.bf16.msra.mxu0 %v2387_v55  ;;  %v91_v38 = vld [vmem:[%s2910_s1 + $0x1f8] sm:$0xff]  ;;  %v90_v44 = vld [vmem:[%s2910_s1 + $0x1f0] sm:$0xff]  ;;  %v94_v50 = vld [vmem:[%s2912_s0] sm:$0xff] }
  0x17   :  { %1570 = vmatprep.subr.bf16.mxu0 %v2396_v58  ;;  %1600 = vmatpush1.bf16.msra.mxu1 %v2444_v15  ;;  %v2502_v41 = vpack.c.bf16 %v91_v38, %v87_v36  ;;  %v2515_v49 = vpack.c.bf16 %v90_v44, %v86_v43  ;;  %v95_v51 = vld [vmem:[%s2912_s0 + $0x8] sm:$0xff]  ;;  %v97_v61 = vld [vmem:[%s2912_s0 + $0x18] sm:$0xff]  ;;  %v96_v5 = vld [vmem:[%s2912_s0 + $0x10] sm:$0xff] }
  0x18   :  { %1602 = vmatprep.subr.bf16.mxu1 %v2450_v18  ;;  %v26_v23 = vld [vmem:[%s2913_s3] sm:$0xff] }
  0x1a   :  { %1572 = vmatpush1.bf16.msra.mxu0 %v2429_v7 }
  0x1b   :  { %1574 = vmatprep.subr.bf16.mxu0 %v2432_v10  ;;  %1604 = vmatpush1.bf16.msra.mxu1 %v2477_v31 }
  0x1c   :  { %1606 = vmatprep.subr.bf16.mxu1 %v2480_v32 }
  0x1e   :  { %1576 = vmatpush1.bf16.msra.mxu0 %v2465_v24 }
  0x1f   :  { %1578 = vmatprep.subr.bf16.mxu0 %v2468_v27  ;;  %1608 = vmatpush1.bf16.msra.mxu1 %v2499_v40 }
  0x20   :  { %1610 = vmatprep.subr.bf16.mxu1 %v2502_v41 }
  0x22   :  { %1580 = vmatpush1.bf16.msra.mxu0 %v2495_v39 }
  0x23   :  { %1614 = vmatprep.subr.bf16.mxu0 %v2237_v4  ;;  %1612 = vmatpush1.bf16.msra.mxu1 %v2515_v49 }
  0x24   :  { %1646 = vmatprep.subr.bf16.mxu1 %v2289_v22 }
  0x25   :  { %163 = vmatmul.mubr.f32.vlgmr.msra.gmra.mrb[0].mxu0 %v24_v47 }
  0x26   :  { %1616 = vmatpush1.bf16.msra.mxu0 %v2248_v8  ;;  %334 = vmatprep.mubr.f32.mxu0 %v2190_v3 }
  0x27   :  { %1618 = vmatprep.subr.bf16.mxu0 %v2250_v9  ;;  %234 = vmatmul.mubr.f32.vlgmr.msra.gmra.mrb[0].mxu1 %v24_v47 }
  0x28   :  { %1648 = vmatpush1.bf16.msra.mxu1 %v2297_v25  ;;  %405 = vmatprep.mubr.f32.mxu1 %v2190_v3 }
  0x29   :  { %1650 = vmatprep.subr.bf16.mxu1 %v2322_v33 }
  0x2a   :  { %1620 = vmatpush1.bf16.msra.mxu0 %v2266_v14 }
  0x2b   :  { %1622 = vmatprep.subr.bf16.mxu0 %v2275_v17 }
  0x2c   :  { %1652 = vmatpush1.bf16.msra.mxu1 %v2333_v37 }
  0x2d   :  { %1654 = vmatprep.subr.bf16.mxu1 %v2357_v45 }
  0x2e   :  { %1624 = vmatpush1.bf16.msra.mxu0 %v2300_v26 }
  0x2f   :  { %1626 = vmatprep.subr.bf16.mxu0 %v2313_v30 }
  0x30   :  { %1656 = vmatpush1.bf16.msra.mxu1 %v2366_v48 }
  0x31   :  { %1658 = vmatprep.subr.bf16.mxu1 %v2378_v52 }
  0x32   :  { %1628 = vmatpush1.bf16.msra.mxu0 %v2349_v42 }
  0x33   :  { %1630 = vmatprep.subr.bf16.mxu0 %v2360_v46 }
  0x34   :  { %1660 = vmatpush1.bf16.msra.mxu1 %v2408_v62 }
  0x35   :  { %1662 = vmatprep.subr.bf16.mxu1 %v2414_v0 }
  0x36   :  { %1632 = vmatpush1.bf16.msra.mxu0 %v2387_v55 }
  0x37   :  { %1634 = vmatprep.subr.bf16.mxu0 %v2396_v58 }
  0x38   :  { %1664 = vmatpush1.bf16.msra.mxu1 %v2444_v15 }
  0x39   :  { %1666 = vmatprep.subr.bf16.mxu1 %v2450_v18 }
  0x3a   :  { %1636 = vmatpush1.bf16.msra.mxu0 %v2429_v7 }
  0x3b   :  { %1638 = vmatprep.subr.bf16.mxu0 %v2432_v10 }
  0x3c   :  { %1668 = vmatpush1.bf16.msra.mxu1 %v2477_v31 }
  0x3d   :  { %1670 = vmatprep.subr.bf16.mxu1 %v2480_v32 }
  0x3e   :  { %1640 = vmatpush1.bf16.msra.mxu0 %v2465_v24 }
  0x3f   :  { %1642 = vmatprep.subr.bf16.mxu0 %v2468_v27 }
  0x40   :  { %1672 = vmatpush1.bf16.msra.mxu1 %v2499_v40 }
  0x41   :  { %1674 = vmatprep.subr.bf16.mxu1 %v2502_v41 }
  0x42   :  { %1644 = vmatpush1.bf16.msra.mxu0 %v2495_v39 }
  0x43   :  { %1678 = vmatprep.subr.bf16.mxu0 %v2237_v4 }
  0x44   :  { %1676 = vmatpush1.bf16.msra.mxu1 %v2515_v49 }
  0x45   :  { %1710 = vmatprep.subr.bf16.mxu1 %v2289_v22 }
  0xf8   :  { %v164_v53 = vpop.f32.mrb[0].mxu0 }
  0xf9   :  { %v165_v54 = vadd.f32 %v164_v53, %v94_v50  ;;  %v166_v56 = vpop.f32.mrb[1].mxu0  ;;  %v1493_v50 = vld [vmem:[%s2912_s0 + $0x20] sm:$0xff] }
  0xfa   :  { %v167_v57 = vadd.f32 %v166_v56, %v95_v51  ;;  %v235_v63 = vpop.f32.mrb[0].mxu1  ;;  %v1494_v51 = vld [vmem:[%s2912_s0 + $0x28] sm:$0xff] }
  0xfb   :  { %v1490_v59 = vmul.f32 -1.442695, %v165_v54  ;;  %v237_v1 = vpop.f32.mrb[1].mxu1  ;;  %v236_v11 = vadd.f32 %v235_v63, %v96_v5  ;;  %v1495_v5 = vld [vmem:[%s2912_s0 + $0x30] sm:$0xff] }
  0xfc   :  { %v1491_v60 = vmul.f32 -1.442695, %v167_v57  ;;  %v238_v2 = vadd.f32 %v237_v1, %v97_v61  ;;  %v1496_v1 = vld [vmem:[%s2912_s0 + $0x38] sm:$0xff] }
  0xfd   :  { %2062 = vpow2.f32 %v1490_v59 }
  0xfe   :  { %2064 = vpow2.f32 %v1491_v60  ;;  %v1492_v6 = vmul.f32 -1.442695, %v238_v2 }
 0x100   :  { %2066 = vpow2.f32 %v1492_v6 }
 0x101   :  { %2068 = vtanh.f32 %v236_v11 }
 0x107   :  { %v2063_v12 = vpop.eup %2062 }
 0x108   :  { %v2065_v13 = vpop.eup %2064  ;;  %v243_v16 = vadd.f32 1.0, %v2063_v12 }
 0x109   :  { %v249_v19 = vadd.f32 1.0, %v2065_v13 }
 0x10a   :  { %2070 = vrcp.f32 %v243_v16  ;;  %v2067_v20 = vpop.eup %2066 }
 0x10b   :  { %2072 = vrcp.f32 %v249_v19  ;;  %v2069_v21 = vpop.eup %2068  ;;  %v256_v29 = vadd.f32 1.0, %v2067_v20 }
 0x10d   :  { %2074 = vrcp.f32 %v256_v29 }
 0x114   :  { %v2071_v28 = vpop.eup %2070 }
 0x115   :  { %v2073_v34 = vpop.eup %2072  ;;  %v260_v35 = vmul.f32 %v2071_v28, %v2069_v21 }
 0x116   :  { %v259_v36 = vmul.f32 %v2073_v34, %v26_v23 }
 0x117   :  { %v2075_v43 = vpop.eup %2074 }
 0x118   :  { %v2570_v38 = vadd.f32 %v260_v35, %v259_v36 }
 0x11a   :  { %2076 = vtanh.f32 %v2570_v38 }
 0x124   :  { %v2077_v44 = vpop.eup %2076 }
 0x125   :  { %v263_v47 = vmul.f32 %v2077_v44, %v2075_v43 }
 0x127   :  { %264 = vst [vmem:[%s2914_s4] sm:$0xff] %v263_v47  ;;  %335 = vmatmul.mubr.f32.vlgmr.msra.gmra.mrb[2].mxu0 %v263_v47  ;;  %406 = vmatmul.mubr.f32.vlgmr.msra.gmra.mrb[2].mxu1 %v263_v47 }
 0x128   :  { %1680 = vmatpush1.bf16.msra.mxu0 %v2248_v8  ;;  %1712 = vmatpush1.bf16.msra.mxu1 %v2297_v25 }
 0x129   :  { %1682 = vmatprep.subr.bf16.mxu0 %v2250_v9  ;;  %1714 = vmatprep.subr.bf16.mxu1 %v2322_v33 }
 0x12a   :  { %507 = vmatprep.mubr.f32.mxu0 %v2190_v3  ;;  %578 = vmatprep.mubr.f32.mxu1 %v2190_v3 }
 0x12c   :  { %1684 = vmatpush1.bf16.msra.mxu0 %v2266_v14  ;;  %1716 = vmatpush1.bf16.msra.mxu1 %v2333_v37 }
 0x12d   :  { %1686 = vmatprep.subr.bf16.mxu0 %v2275_v17  ;;  %1718 = vmatprep.subr.bf16.mxu1 %v2357_v45 }
 0x130   :  { %1688 = vmatpush1.bf16.msra.mxu0 %v2300_v26  ;;  %1720 = vmatpush1.bf16.msra.mxu1 %v2366_v48 }
 0x131   :  { %1690 = vmatprep.subr.bf16.mxu0 %v2313_v30  ;;  %1722 = vmatprep.subr.bf16.mxu1 %v2378_v52 }
 0x134   :  { %1692 = vmatpush1.bf16.msra.mxu0 %v2349_v42  ;;  %1724 = vmatpush1.bf16.msra.mxu1 %v2408_v62 }
 0x135   :  { %1694 = vmatprep.subr.bf16.mxu0 %v2360_v46  ;;  %1726 = vmatprep.subr.bf16.mxu1 %v2414_v0 }
 0x138   :  { %1696 = vmatpush1.bf16.msra.mxu0 %v2387_v55  ;;  %1728 = vmatpush1.bf16.msra.mxu1 %v2444_v15 }
 0x139   :  { %1698 = vmatprep.subr.bf16.mxu0 %v2396_v58  ;;  %1730 = vmatprep.subr.bf16.mxu1 %v2450_v18 }
 0x13c   :  { %1700 = vmatpush1.bf16.msra.mxu0 %v2429_v7  ;;  %1732 = vmatpush1.bf16.msra.mxu1 %v2477_v31 }
 0x13d   :  { %1702 = vmatprep.subr.bf16.mxu0 %v2432_v10  ;;  %1734 = vmatprep.subr.bf16.mxu1 %v2480_v32 }
 0x140   :  { %1704 = vmatpush1.bf16.msra.mxu0 %v2465_v24  ;;  %1736 = vmatpush1.bf16.msra.mxu1 %v2499_v40 }
 0x141   :  { %1706 = vmatprep.subr.bf16.mxu0 %v2468_v27  ;;  %1738 = vmatprep.subr.bf16.mxu1 %v2502_v41 }
 0x144   :  { %1708 = vmatpush1.bf16.msra.mxu0 %v2495_v39  ;;  %1740 = vmatpush1.bf16.msra.mxu1 %v2515_v49 }
 0x145   :  { %1742 = vmatprep.subr.bf16.mxu0 %v2237_v4  ;;  %1774 = vmatprep.subr.bf16.mxu1 %v2289_v22 }
 0x1fa   :  { %v336_v53 = vpop.f32.mrb[2].mxu0  ;;  %v407_v54 = vpop.f32.mrb[2].mxu1 }
 0x1fb   :  { %v337_v56 = vadd.f32 %v1493_v50, %v336_v53  ;;  %v338_v57 = vpop.f32.mrb[3].mxu0  ;;  %v409_v59 = vpop.f32.mrb[3].mxu1  ;;  %v408_v11 = vadd.f32 %v1495_v5, %v407_v54  ;;  %v1502_v50 = vld [vmem:[%s2912_s0 + $0x48] sm:$0xff] }
 0x1fc   :  { %v339_v60 = vadd.f32 %v1494_v51, %v338_v57  ;;  %v410_v2 = vadd.f32 %v1496_v1, %v409_v59 }
 0x1fd   :  { %v1497_v61 = vmul.f32 -1.442695, %v337_v56 }
 0x1fe   :  { %v1498_v63 = vmul.f32 -1.442695, %v339_v60  ;;  %v1499_v6 = vmul.f32 -1.442695, %v410_v2  ;;  %v1503_v2 = vld [vmem:[%s2912_s0 + $0x50] sm:$0xff] }
 0x1ff   :  { %2078 = vpow2.f32 %v1497_v61 }
 0x200   :  { %2080 = vpow2.f32 %v1498_v63  ;;  %v1504_v63 = vld [vmem:[%s2912_s0 + $0x58] sm:$0xff] }
 0x201   :  { %2082 = vpow2.f32 %v1499_v6 }
 0x202   :  { %2084 = vtanh.f32 %v408_v11 }
 0x209   :  { %v2079_v12 = vpop.eup %2078 }
 0x20a   :  { %v2081_v13 = vpop.eup %2080  ;;  %v415_v16 = vadd.f32 1.0, %v2079_v12 }
 0x20b   :  { %v421_v19 = vadd.f32 1.0, %v2081_v13  ;;  %v2083_v20 = vpop.eup %2082 }
 0x20c   :  { %2086 = vrcp.f32 %v415_v16  ;;  %v2085_v21 = vpop.eup %2084  ;;  %v428_v34 = vadd.f32 1.0, %v2083_v20 }
 0x20d   :  { %2088 = vrcp.f32 %v421_v19 }
 0x20e   :  { %2090 = vrcp.f32 %v428_v34 }
 0x216   :  { %v2087_v23 = vpop.eup %2086 }
 0x217   :  { %v2089_v28 = vpop.eup %2088  ;;  %v432_v29 = vmul.f32 %v2087_v23, %v2085_v21 }
 0x218   :  { %v431_v35 = vmul.f32 %v2089_v28, %v2570_v38  ;;  %v2091_v43 = vpop.eup %2090  ;;  %v1501_v38 = vld [vmem:[%s2912_s0 + $0x40] sm:$0xff] }
 0x21a   :  { %v2623_v36 = vadd.f32 %v432_v29, %v431_v35 }
 0x21c   :  { %2092 = vtanh.f32 %v2623_v36 }
 0x226   :  { %v2093_v44 = vpop.eup %2092 }
 0x227   :  { %v435_v47 = vmul.f32 %v2093_v44, %v2091_v43 }
 0x229   :  { %1500 = vst [vmem:[%s2914_s4 + $0x8] sm:$0xff] %v435_v47  ;;  %508 = vmatmul.mubr.f32.vlgmr.msra.gmra.mrb[4].mxu0 %v435_v47  ;;  %579 = vmatmul.mubr.f32.vlgmr.msra.gmra.mrb[4].mxu1 %v435_v47 }
 0x22a   :  { %1744 = vmatpush1.bf16.msra.mxu0 %v2248_v8  ;;  %1776 = vmatpush1.bf16.msra.mxu1 %v2297_v25 }
 0x22b   :  { %1746 = vmatprep.subr.bf16.mxu0 %v2250_v9  ;;  %1778 = vmatprep.subr.bf16.mxu1 %v2322_v33 }
 0x22c   :  { %680 = vmatprep.mubr.f32.mxu0 %v2190_v3  ;;  %751 = vmatprep.mubr.f32.mxu1 %v2190_v3 }
 0x22e   :  { %1748 = vmatpush1.bf16.msra.mxu0 %v2266_v14  ;;  %1780 = vmatpush1.bf16.msra.mxu1 %v2333_v37 }
 0x22f   :  { %1750 = vmatprep.subr.bf16.mxu0 %v2275_v17  ;;  %1782 = vmatprep.subr.bf16.mxu1 %v2357_v45 }
 0x232   :  { %1752 = vmatpush1.bf16.msra.mxu0 %v2300_v26  ;;  %1784 = vmatpush1.bf16.msra.mxu1 %v2366_v48 }
 0x233   :  { %1754 = vmatprep.subr.bf16.mxu0 %v2313_v30  ;;  %1786 = vmatprep.subr.bf16.mxu1 %v2378_v52 }
 0x236   :  { %1756 = vmatpush1.bf16.msra.mxu0 %v2349_v42  ;;  %1788 = vmatpush1.bf16.msra.mxu1 %v2408_v62 }
 0x237   :  { %1758 = vmatprep.subr.bf16.mxu0 %v2360_v46  ;;  %1790 = vmatprep.subr.bf16.mxu1 %v2414_v0 }
 0x23a   :  { %1760 = vmatpush1.bf16.msra.mxu0 %v2387_v55  ;;  %1792 = vmatpush1.bf16.msra.mxu1 %v2444_v15 }
 0x23b   :  { %1762 = vmatprep.subr.bf16.mxu0 %v2396_v58  ;;  %1794 = vmatprep.subr.bf16.mxu1 %v2450_v18 }
 0x23e   :  { %1764 = vmatpush1.bf16.msra.mxu0 %v2429_v7  ;;  %1796 = vmatpush1.bf16.msra.mxu1 %v2477_v31 }
 0x23f   :  { %1766 = vmatprep.subr.bf16.mxu0 %v2432_v10  ;;  %1798 = vmatprep.subr.bf16.mxu1 %v2480_v32 }
 0x242   :  { %1768 = vmatpush1.bf16.msra.mxu0 %v2465_v24  ;;  %1800 = vmatpush1.bf16.msra.mxu1 %v2499_v40 }
 0x243   :  { %1770 = vmatprep.subr.bf16.mxu0 %v2468_v27  ;;  %1802 = vmatprep.subr.bf16.mxu1 %v2502_v41 }
 0x246   :  { %1772 = vmatpush1.bf16.msra.mxu0 %v2495_v39  ;;  %1804 = vmatpush1.bf16.msra.mxu1 %v2515_v49 }
 0x247   :  { %1806 = vmatprep.subr.bf16.mxu0 %v2237_v4  ;;  %1838 = vmatprep.subr.bf16.mxu1 %v2289_v22 }
 0x2fc   :  { %v509_v51 = vpop.f32.mrb[4].mxu0  ;;  %v580_v53 = vpop.f32.mrb[4].mxu1 }
 0x2fd   :  { %v510_v54 = vadd.f32 %v1501_v38, %v509_v51  ;;  %v511_v56 = vpop.f32.mrb[5].mxu0  ;;  %v582_v57 = vpop.f32.mrb[5].mxu1  ;;  %v581_v6 = vadd.f32 %v1503_v2, %v580_v53  ;;  %v1510_v38 = vld [vmem:[%s2912_s0 + $0x68] sm:$0xff] }
 0x2fe   :  { %v512_v59 = vadd.f32 %v1502_v50, %v511_v56  ;;  %v583_v1 = vadd.f32 %v1504_v63, %v582_v57 }
 0x2ff   :  { %v1505_v60 = vmul.f32 -1.442695, %v510_v54 }
 0x300   :  { %v1506_v61 = vmul.f32 -1.442695, %v512_v59  ;;  %v1507_v5 = vmul.f32 -1.442695, %v583_v1  ;;  %v1511_v1 = vld [vmem:[%s2912_s0 + $0x70] sm:$0xff] }
 0x301   :  { %2094 = vpow2.f32 %v1505_v60 }
 0x302   :  { %2096 = vpow2.f32 %v1506_v61  ;;  %v1512_v61 = vld [vmem:[%s2912_s0 + $0x78] sm:$0xff] }
 0x303   :  { %2098 = vpow2.f32 %v1507_v5 }
 0x304   :  { %2100 = vtanh.f32 %v581_v6 }
 0x30b   :  { %v2095_v11 = vpop.eup %2094 }
 0x30c   :  { %v2097_v12 = vpop.eup %2096  ;;  %v588_v13 = vadd.f32 1.0, %v2095_v11 }
 0x30d   :  { %v594_v16 = vadd.f32 1.0, %v2097_v12  ;;  %v2099_v19 = vpop.eup %2098 }
 0x30e   :  { %2102 = vrcp.f32 %v588_v13  ;;  %v2101_v20 = vpop.eup %2100  ;;  %v601_v29 = vadd.f32 1.0, %v2099_v19 }
 0x30f   :  { %2104 = vrcp.f32 %v594_v16 }
 0x310   :  { %2106 = vrcp.f32 %v601_v29 }
 0x318   :  { %v2103_v21 = vpop.eup %2102 }
 0x319   :  { %v2105_v23 = vpop.eup %2104  ;;  %v605_v28 = vmul.f32 %v2103_v21, %v2101_v20 }
 0x31a   :  { %v604_v34 = vmul.f32 %v2105_v23, %v2623_v36  ;;  %v2107_v43 = vpop.eup %2106  ;;  %v1509_v36 = vld [vmem:[%s2912_s0 + $0x60] sm:$0xff] }
 0x31c   :  { %v2676_v35 = vadd.f32 %v605_v28, %v604_v34 }
 0x31e   :  { %2108 = vtanh.f32 %v2676_v35 }
 0x328   :  { %v2109_v44 = vpop.eup %2108 }
 0x329   :  { %v608_v47 = vmul.f32 %v2109_v44, %v2107_v43 }
 0x32b   :  { %1508 = vst [vmem:[%s2914_s4 + $0x10] sm:$0xff] %v608_v47  ;;  %681 = vmatmul.mubr.f32.vlgmr.msra.gmra.mrb[6].mxu0 %v608_v47  ;;  %752 = vmatmul.mubr.f32.vlgmr.msra.gmra.mrb[6].mxu1 %v608_v47 }
 0x32c   :  { %1808 = vmatpush1.bf16.msra.mxu0 %v2248_v8  ;;  %1840 = vmatpush1.bf16.msra.mxu1 %v2297_v25 }
 0x32d   :  { %1810 = vmatprep.subr.bf16.mxu0 %v2250_v9  ;;  %1842 = vmatprep.subr.bf16.mxu1 %v2322_v33 }
 0x32e   :  { %853 = vmatprep.mubr.f32.mxu0 %v2190_v3  ;;  %924 = vmatprep.mubr.f32.mxu1 %v2190_v3 }
 0x330   :  { %1812 = vmatpush1.bf16.msra.mxu0 %v2266_v14  ;;  %1844 = vmatpush1.bf16.msra.mxu1 %v2333_v37 }
 0x331   :  { %1814 = vmatprep.subr.bf16.mxu0 %v2275_v17  ;;  %1846 = vmatprep.subr.bf16.mxu1 %v2357_v45 }
 0x334   :  { %1816 = vmatpush1.bf16.msra.mxu0 %v2300_v26  ;;  %1848 = vmatpush1.bf16.msra.mxu1 %v2366_v48 }
 0x335   :  { %1818 = vmatprep.subr.bf16.mxu0 %v2313_v30  ;;  %1850 = vmatprep.subr.bf16.mxu1 %v2378_v52 }
 0x338   :  { %1820 = vmatpush1.bf16.msra.mxu0 %v2349_v42  ;;  %1852 = vmatpush1.bf16.msra.mxu1 %v2408_v62 }
 0x339   :  { %1822 = vmatprep.subr.bf16.mxu0 %v2360_v46  ;;  %1854 = vmatprep.subr.bf16.mxu1 %v2414_v0 }
 0x33c   :  { %1824 = vmatpush1.bf16.msra.mxu0 %v2387_v55  ;;  %1856 = vmatpush1.bf16.msra.mxu1 %v2444_v15 }
 0x33d   :  { %1826 = vmatprep.subr.bf16.mxu0 %v2396_v58  ;;  %1858 = vmatprep.subr.bf16.mxu1 %v2450_v18 }
 0x340   :  { %1828 = vmatpush1.bf16.msra.mxu0 %v2429_v7  ;;  %1860 = vmatpush1.bf16.msra.mxu1 %v2477_v31 }
 0x341   :  { %1830 = vmatprep.subr.bf16.mxu0 %v2432_v10  ;;  %1862 = vmatprep.subr.bf16.mxu1 %v2480_v32 }
 0x344   :  { %1832 = vmatpush1.bf16.msra.mxu0 %v2465_v24  ;;  %1864 = vmatpush1.bf16.msra.mxu1 %v2499_v40 }
 0x345   :  { %1834 = vmatprep.subr.bf16.mxu0 %v2468_v27  ;;  %1866 = vmatprep.subr.bf16.mxu1 %v2502_v41 }
 0x348   :  { %1836 = vmatpush1.bf16.msra.mxu0 %v2495_v39  ;;  %1868 = vmatpush1.bf16.msra.mxu1 %v2515_v49 }
 0x349   :  { %1870 = vmatprep.subr.bf16.mxu0 %v2237_v4  ;;  %1902 = vmatprep.subr.bf16.mxu1 %v2289_v22 }
 0x3fe   :  { %v682_v50 = vpop.f32.mrb[6].mxu0  ;;  %v753_v51 = vpop.f32.mrb[6].mxu1 }
 0x3ff   :  { %v683_v53 = vadd.f32 %v1509_v36, %v682_v50  ;;  %v684_v54 = vpop.f32.mrb[7].mxu0  ;;  %v755_v56 = vpop.f32.mrb[7].mxu1  ;;  %v754_v5 = vadd.f32 %v1511_v1, %v753_v51  ;;  %v1518_v36 = vld [vmem:[%s2912_s0 + $0x88] sm:$0xff] }
 0x400   :  { %v685_v57 = vadd.f32 %v1510_v38, %v684_v54  ;;  %v756_v63 = vadd.f32 %v1512_v61, %v755_v56 }
 0x401   :  { %v1513_v59 = vmul.f32 -1.442695, %v683_v53 }
 0x402   :  { %v1514_v60 = vmul.f32 -1.442695, %v685_v57  ;;  %v1515_v2 = vmul.f32 -1.442695, %v756_v63  ;;  %v1519_v63 = vld [vmem:[%s2912_s0 + $0x90] sm:$0xff] }
 0x403   :  { %2110 = vpow2.f32 %v1513_v59 }
 0x404   :  { %2112 = vpow2.f32 %v1514_v60  ;;  %v1520_v60 = vld [vmem:[%s2912_s0 + $0x98] sm:$0xff] }
 0x405   :  { %2114 = vpow2.f32 %v1515_v2 }
 0x406   :  { %2116 = vtanh.f32 %v754_v5 }
 0x40d   :  { %v2111_v6 = vpop.eup %2110 }
 0x40e   :  { %v2113_v11 = vpop.eup %2112  ;;  %v761_v12 = vadd.f32 1.0, %v2111_v6 }
 0x40f   :  { %v767_v13 = vadd.f32 1.0, %v2113_v11  ;;  %v2115_v16 = vpop.eup %2114 }
 0x410   :  { %2118 = vrcp.f32 %v761_v12  ;;  %v2117_v19 = vpop.eup %2116  ;;  %v774_v28 = vadd.f32 1.0, %v2115_v16 }
 0x411   :  { %2120 = vrcp.f32 %v767_v13 }
 0x412   :  { %2122 = vrcp.f32 %v774_v28 }
 0x41a   :  { %v2119_v20 = vpop.eup %2118 }
 0x41b   :  { %v2121_v21 = vpop.eup %2120  ;;  %v778_v23 = vmul.f32 %v2119_v20, %v2117_v19 }
 0x41c   :  { %v777_v29 = vmul.f32 %v2121_v21, %v2676_v35  ;;  %v2123_v43 = vpop.eup %2122  ;;  %v1517_v35 = vld [vmem:[%s2912_s0 + $0x80] sm:$0xff] }
 0x41e   :  { %v2729_v34 = vadd.f32 %v778_v23, %v777_v29 }
 0x420   :  { %2124 = vtanh.f32 %v2729_v34 }
 0x42a   :  { %v2125_v44 = vpop.eup %2124 }
 0x42b   :  { %v781_v47 = vmul.f32 %v2125_v44, %v2123_v43 }
 0x42d   :  { %1516 = vst [vmem:[%s2914_s4 + $0x18] sm:$0xff] %v781_v47  ;;  %854 = vmatmul.mubr.f32.vlgmr.msra.gmra.mrb[8].mxu0 %v781_v47  ;;  %925 = vmatmul.mubr.f32.vlgmr.msra.gmra.mrb[8].mxu1 %v781_v47 }
 0x42e   :  { %1872 = vmatpush1.bf16.msra.mxu0 %v2248_v8  ;;  %1904 = vmatpush1.bf16.msra.mxu1 %v2297_v25 }
 0x42f   :  { %1874 = vmatprep.subr.bf16.mxu0 %v2250_v9  ;;  %1906 = vmatprep.subr.bf16.mxu1 %v2322_v33 }
 0x430   :  { %1026 = vmatprep.mubr.f32.mxu0 %v2190_v3  ;;  %1097 = vmatprep.mubr.f32.mxu1 %v2190_v3 }
 0x432   :  { %1876 = vmatpush1.bf16.msra.mxu0 %v2266_v14  ;;  %1908 = vmatpush1.bf16.msra.mxu1 %v2333_v37 }
 0x433   :  { %1878 = vmatprep.subr.bf16.mxu0 %v2275_v17  ;;  %1910 = vmatprep.subr.bf16.mxu1 %v2357_v45 }
 0x436   :  { %1880 = vmatpush1.bf16.msra.mxu0 %v2300_v26  ;;  %1912 = vmatpush1.bf16.msra.mxu1 %v2366_v48 }
 0x437   :  { %1882 = vmatprep.subr.bf16.mxu0 %v2313_v30  ;;  %1914 = vmatprep.subr.bf16.mxu1 %v2378_v52 }
 0x43a   :  { %1884 = vmatpush1.bf16.msra.mxu0 %v2349_v42  ;;  %1916 = vmatpush1.bf16.msra.mxu1 %v2408_v62 }
 0x43b   :  { %1886 = vmatprep.subr.bf16.mxu0 %v2360_v46  ;;  %1918 = vmatprep.subr.bf16.mxu1 %v2414_v0 }
 0x43e   :  { %1888 = vmatpush1.bf16.msra.mxu0 %v2387_v55  ;;  %1920 = vmatpush1.bf16.msra.mxu1 %v2444_v15 }
 0x43f   :  { %1890 = vmatprep.subr.bf16.mxu0 %v2396_v58  ;;  %1922 = vmatprep.subr.bf16.mxu1 %v2450_v18 }
 0x442   :  { %1892 = vmatpush1.bf16.msra.mxu0 %v2429_v7  ;;  %1924 = vmatpush1.bf16.msra.mxu1 %v2477_v31 }
 0x443   :  { %1894 = vmatprep.subr.bf16.mxu0 %v2432_v10  ;;  %1926 = vmatprep.subr.bf16.mxu1 %v2480_v32 }
 0x446   :  { %1896 = vmatpush1.bf16.msra.mxu0 %v2465_v24  ;;  %1928 = vmatpush1.bf16.msra.mxu1 %v2499_v40 }
 0x447   :  { %1898 = vmatprep.subr.bf16.mxu0 %v2468_v27  ;;  %1930 = vmatprep.subr.bf16.mxu1 %v2502_v41 }
 0x44a   :  { %1900 = vmatpush1.bf16.msra.mxu0 %v2495_v39  ;;  %1932 = vmatpush1.bf16.msra.mxu1 %v2515_v49 }
 0x44b   :  { %1934 = vmatprep.subr.bf16.mxu0 %v2237_v4  ;;  %1966 = vmatprep.subr.bf16.mxu1 %v2289_v22 }
 0x500   :  { %v855_v38 = vpop.f32.mrb[8].mxu0  ;;  %v926_v50 = vpop.f32.mrb[8].mxu1 }
 0x501   :  { %v856_v51 = vadd.f32 %v1517_v35, %v855_v38  ;;  %v857_v53 = vpop.f32.mrb[9].mxu0  ;;  %v928_v54 = vpop.f32.mrb[9].mxu1  ;;  %v927_v2 = vadd.f32 %v1519_v63, %v926_v50  ;;  %v1526_v35 = vld [vmem:[%s2912_s0 + $0xa8] sm:$0xff] }
 0x502   :  { %v858_v56 = vadd.f32 %v1518_v36, %v857_v53  ;;  %v929_v61 = vadd.f32 %v1520_v60, %v928_v54 }
 0x503   :  { %v1521_v57 = vmul.f32 -1.442695, %v856_v51 }
 0x504   :  { %v1522_v59 = vmul.f32 -1.442695, %v858_v56  ;;  %v1523_v1 = vmul.f32 -1.442695, %v929_v61 }
 0x505   :  { %2126 = vpow2.f32 %v1521_v57 }
 0x506   :  { %2128 = vpow2.f32 %v1522_v59  ;;  %v1527_v59 = vld [vmem:[%s2912_s0 + $0xb0] sm:$0xff] }
 0x507   :  { %2130 = vpow2.f32 %v1523_v1 }
 0x508   :  { %2132 = vtanh.f32 %v927_v2 }
 0x50f   :  { %v2127_v5 = vpop.eup %2126 }
 0x510   :  { %v2129_v6 = vpop.eup %2128  ;;  %v934_v11 = vadd.f32 1.0, %v2127_v5 }
 0x511   :  { %v940_v12 = vadd.f32 1.0, %v2129_v6  ;;  %v2131_v13 = vpop.eup %2130 }
 0x512   :  { %2134 = vrcp.f32 %v934_v11  ;;  %v2133_v16 = vpop.eup %2132  ;;  %v947_v23 = vadd.f32 1.0, %v2131_v13 }
 0x513   :  { %2136 = vrcp.f32 %v940_v12 }
 0x514   :  { %2138 = vrcp.f32 %v947_v23 }
 0x51c   :  { %v2135_v19 = vpop.eup %2134 }
 0x51d   :  { %v2137_v20 = vpop.eup %2136  ;;  %v951_v21 = vmul.f32 %v2135_v19, %v2133_v16 }
 0x51e   :  { %v950_v28 = vmul.f32 %v2137_v20, %v2729_v34  ;;  %v2139_v43 = vpop.eup %2138  ;;  %v1525_v34 = vld [vmem:[%s2912_s0 + $0xa0] sm:$0xff] }
 0x520   :  { %v2782_v29 = vadd.f32 %v951_v21, %v950_v28 }
 0x522   :  { %2140 = vtanh.f32 %v2782_v29 }
 0x52c   :  { %v2141_v44 = vpop.eup %2140 }
 0x52d   :  { %v954_v47 = vmul.f32 %v2141_v44, %v2139_v43 }
 0x52f   :  { %1524 = vst [vmem:[%s2914_s4 + $0x20] sm:$0xff] %v954_v47  ;;  %1027 = vmatmul.mubr.f32.vlgmr.msra.gmra.mrb[10].mxu0 %v954_v47  ;;  %1098 = vmatmul.mubr.f32.vlgmr.msra.gmra.mrb[10].mxu1 %v954_v47 }
 0x530   :  { %1936 = vmatpush1.bf16.msra.mxu0 %v2248_v8  ;;  %1968 = vmatpush1.bf16.msra.mxu1 %v2297_v25 }
 0x531   :  { %1938 = vmatprep.subr.bf16.mxu0 %v2250_v9  ;;  %1970 = vmatprep.subr.bf16.mxu1 %v2322_v33 }
 0x532   :  { %1199 = vmatprep.mubr.f32.mxu0 %v2190_v3  ;;  %1270 = vmatprep.mubr.f32.mxu1 %v2190_v3 }
 0x534   :  { %1940 = vmatpush1.bf16.msra.mxu0 %v2266_v14  ;;  %1972 = vmatpush1.bf16.msra.mxu1 %v2333_v37 }
 0x535   :  { %1942 = vmatprep.subr.bf16.mxu0 %v2275_v17  ;;  %1974 = vmatprep.subr.bf16.mxu1 %v2357_v45 }
 0x538   :  { %1944 = vmatpush1.bf16.msra.mxu0 %v2300_v26  ;;  %1976 = vmatpush1.bf16.msra.mxu1 %v2366_v48 }
 0x539   :  { %1946 = vmatprep.subr.bf16.mxu0 %v2313_v30  ;;  %1978 = vmatprep.subr.bf16.mxu1 %v2378_v52 }
 0x53c   :  { %1948 = vmatpush1.bf16.msra.mxu0 %v2349_v42  ;;  %1980 = vmatpush1.bf16.msra.mxu1 %v2408_v62 }
 0x53d   :  { %1950 = vmatprep.subr.bf16.mxu0 %v2360_v46  ;;  %1982 = vmatprep.subr.bf16.mxu1 %v2414_v0 }
 0x540   :  { %1952 = vmatpush1.bf16.msra.mxu0 %v2387_v55  ;;  %1984 = vmatpush1.bf16.msra.mxu1 %v2444_v15 }
 0x541   :  { %1954 = vmatprep.subr.bf16.mxu0 %v2396_v58  ;;  %1986 = vmatprep.subr.bf16.mxu1 %v2450_v18 }
 0x544   :  { %1956 = vmatpush1.bf16.msra.mxu0 %v2429_v7  ;;  %1988 = vmatpush1.bf16.msra.mxu1 %v2477_v31 }
 0x545   :  { %1958 = vmatprep.subr.bf16.mxu0 %v2432_v10  ;;  %1990 = vmatprep.subr.bf16.mxu1 %v2480_v32 }
 0x548   :  { %1960 = vmatpush1.bf16.msra.mxu0 %v2465_v24  ;;  %1992 = vmatpush1.bf16.msra.mxu1 %v2499_v40 }
 0x549   :  { %1962 = vmatprep.subr.bf16.mxu0 %v2468_v27  ;;  %1994 = vmatprep.subr.bf16.mxu1 %v2502_v41 }
 0x54c   :  { %1964 = vmatpush1.bf16.msra.mxu0 %v2495_v39  ;;  %1996 = vmatpush1.bf16.msra.mxu1 %v2515_v49 }
 0x54d   :  { %1998 = vmatprep.subr.bf16.mxu0 %v2237_v4  ;;  %2030 = vmatprep.subr.bf16.mxu1 %v2289_v22  ;;  %v1528_v4 = vld [vmem:[%s2912_s0 + $0xb8] sm:$0xff] }
 0x602   :  { %v1028_v36 = vpop.f32.mrb[10].mxu0  ;;  %v1099_v38 = vpop.f32.mrb[10].mxu1 }
 0x603   :  { %v1029_v50 = vadd.f32 %v1525_v34, %v1028_v36  ;;  %v1030_v51 = vpop.f32.mrb[11].mxu0  ;;  %v1101_v53 = vpop.f32.mrb[11].mxu1  ;;  %v1100_v61 = vadd.f32 %v1527_v59, %v1099_v38 }
 0x604   :  { %v1031_v54 = vadd.f32 %v1526_v35, %v1030_v51  ;;  %v1102_v22 = vadd.f32 %v1528_v4, %v1101_v53  ;;  %v1544_v53 = vld [vmem:[%s2912_s0 + $0xf8] sm:$0xff] }
 0x605   :  { %v1529_v56 = vmul.f32 -1.442695, %v1029_v50 }
 0x606   :  { %v1530_v57 = vmul.f32 -1.442695, %v1031_v54  ;;  %v1531_v60 = vmul.f32 -1.442695, %v1102_v22 }
 0x607   :  { %2142 = vpow2.f32 %v1529_v56  ;;  %v1543_v56 = vld [vmem:[%s2912_s0 + $0xf0] sm:$0xff] }
 0x608   :  { %2144 = vpow2.f32 %v1530_v57 }
 0x609   :  { %2146 = vpow2.f32 %v1531_v60 }
 0x60a   :  { %2148 = vtanh.f32 %v1100_v61 }
 0x611   :  { %v2143_v63 = vpop.eup %2142 }
 0x612   :  { %v2145_v1 = vpop.eup %2144  ;;  %v1107_v2 = vadd.f32 1.0, %v2143_v63 }
 0x613   :  { %v1113_v5 = vadd.f32 1.0, %v2145_v1  ;;  %v2147_v6 = vpop.eup %2146 }
 0x614   :  { %2150 = vrcp.f32 %v1107_v2  ;;  %v2149_v11 = vpop.eup %2148  ;;  %v1120_v19 = vadd.f32 1.0, %v2147_v6 }
 0x615   :  { %2152 = vrcp.f32 %v1113_v5 }
 0x616   :  { %2154 = vrcp.f32 %v1120_v19 }
 0x61e   :  { %v2151_v12 = vpop.eup %2150 }
 0x61f   :  { %v2153_v13 = vpop.eup %2152  ;;  %v1124_v16 = vmul.f32 %v2151_v12, %v2149_v11 }
 0x620   :  { %v1123_v20 = vmul.f32 %v2153_v13, %v2782_v29  ;;  %v2155_v23 = vpop.eup %2154  ;;  %v1542_v29 = vld [vmem:[%s2912_s0 + $0xe8] sm:$0xff] }
 0x622   :  { %v2835_v21 = vadd.f32 %v1124_v16, %v1123_v20 }
 0x624   :  { %2156 = vtanh.f32 %v2835_v21 }
 0x62e   :  { %v2157_v28 = vpop.eup %2156 }
 0x62f   :  { %v1127_v43 = vmul.f32 %v2157_v28, %v2155_v23 }
 0x631   :  { %1532 = vst [vmem:[%s2914_s4 + $0x28] sm:$0xff] %v1127_v43  ;;  %1200 = vmatmul.mubr.f32.vlgmr.msra.gmra.mrb[12].mxu0 %v1127_v43  ;;  %1271 = vmatmul.mubr.f32.vlgmr.msra.gmra.mrb[12].mxu1 %v1127_v43 }
 0x632   :  { %2000 = vmatpush1.bf16.msra.mxu0 %v2248_v8  ;;  %2032 = vmatpush1.bf16.msra.mxu1 %v2297_v25  ;;  %v1534_v8 = vld [vmem:[%s2912_s0 + $0xc8] sm:$0xff] }
 0x633   :  { %2002 = vmatprep.subr.bf16.mxu0 %v2250_v9  ;;  %2034 = vmatprep.subr.bf16.mxu1 %v2322_v33 }
 0x634   :  { %1372 = vmatprep.mubr.f32.mxu0 %v2190_v3  ;;  %1443 = vmatprep.mubr.f32.mxu1 %v2190_v3  ;;  %v1533_v3 = vld [vmem:[%s2912_s0 + $0xc0] sm:$0xff] }
 0x636   :  { %2004 = vmatpush1.bf16.msra.mxu0 %v2266_v14  ;;  %2036 = vmatpush1.bf16.msra.mxu1 %v2333_v37 }
 0x637   :  { %2006 = vmatprep.subr.bf16.mxu0 %v2275_v17  ;;  %2038 = vmatprep.subr.bf16.mxu1 %v2357_v45 }
 0x63a   :  { %2008 = vmatpush1.bf16.msra.mxu0 %v2300_v26  ;;  %2040 = vmatpush1.bf16.msra.mxu1 %v2366_v48 }
 0x63b   :  { %2010 = vmatprep.subr.bf16.mxu0 %v2313_v30  ;;  %2042 = vmatprep.subr.bf16.mxu1 %v2378_v52 }
 0x63e   :  { %2012 = vmatpush1.bf16.msra.mxu0 %v2349_v42  ;;  %2044 = vmatpush1.bf16.msra.mxu1 %v2408_v62  ;;  %v1536_v42 = vld [vmem:[%s2912_s0 + $0xd8] sm:$0xff] }
 0x63f   :  { %2014 = vmatprep.subr.bf16.mxu0 %v2360_v46  ;;  %2046 = vmatprep.subr.bf16.mxu1 %v2414_v0  ;;  %v1535_v46 = vld [vmem:[%s2912_s0 + $0xd0] sm:$0xff] }
 0x642   :  { %2016 = vmatpush1.bf16.msra.mxu0 %v2387_v55  ;;  %2048 = vmatpush1.bf16.msra.mxu1 %v2444_v15 }
 0x643   :  { %2018 = vmatprep.subr.bf16.mxu0 %v2396_v58  ;;  %2050 = vmatprep.subr.bf16.mxu1 %v2450_v18 }
 0x646   :  { %2020 = vmatpush1.bf16.msra.mxu0 %v2429_v7  ;;  %2052 = vmatpush1.bf16.msra.mxu1 %v2477_v31 }
 0x647   :  { %2022 = vmatprep.subr.bf16.mxu0 %v2432_v10  ;;  %2054 = vmatprep.subr.bf16.mxu1 %v2480_v32 }
 0x64a   :  { %2024 = vmatpush1.bf16.msra.mxu0 %v2465_v24  ;;  %2056 = vmatpush1.bf16.msra.mxu1 %v2499_v40 }
 0x64b   :  { %2026 = vmatprep.subr.bf16.mxu0 %v2468_v27  ;;  %2058 = vmatprep.subr.bf16.mxu1 %v2502_v41 }
 0x64e   :  { %2028 = vmatpush1.bf16.msra.mxu0 %v2495_v39  ;;  %2060 = vmatpush1.bf16.msra.mxu1 %v2515_v49  ;;  %v1541_v49 = vld [vmem:[%s2912_s0 + $0xe0] sm:$0xff] }
 0x704   :  { %v1201_v9 = vpop.f32.mrb[12].mxu0  ;;  %v1272_v14 = vpop.f32.mrb[12].mxu1 }
 0x705   :  { %v1202_v17 = vadd.f32 %v1533_v3, %v1201_v9  ;;  %v1203_v25 = vpop.f32.mrb[13].mxu0  ;;  %v1274_v26 = vpop.f32.mrb[13].mxu1  ;;  %v1273_v52 = vadd.f32 %v1535_v46, %v1272_v14 }
 0x706   :  { %v1204_v30 = vadd.f32 %v1534_v8, %v1203_v25  ;;  %v1275_v45 = vadd.f32 %v1536_v42, %v1274_v26 }
 0x707   :  { %v1537_v33 = vmul.f32 -1.442695, %v1202_v17 }
 0x708   :  { %v1538_v37 = vmul.f32 -1.442695, %v1204_v30  ;;  %v1539_v48 = vmul.f32 -1.442695, %v1275_v45 }
 0x709   :  { %2158 = vpow2.f32 %v1537_v33 }
 0x70a   :  { %2160 = vpow2.f32 %v1538_v37 }
 0x70b   :  { %2162 = vpow2.f32 %v1539_v48 }
 0x70c   :  { %2164 = vtanh.f32 %v1273_v52 }
 0x713   :  { %v2159_v55 = vpop.eup %2158 }
 0x714   :  { %v2161_v58 = vpop.eup %2160  ;;  %v1280_v62 = vadd.f32 1.0, %v2159_v55 }
 0x715   :  { %v1286_v0 = vadd.f32 1.0, %v2161_v58  ;;  %v2163_v7 = vpop.eup %2162 }
 0x716   :  { %2166 = vrcp.f32 %v1280_v62  ;;  %v2165_v10 = vpop.eup %2164  ;;  %v1293_v27 = vadd.f32 1.0, %v2163_v7 }
 0x717   :  { %2168 = vrcp.f32 %v1286_v0 }
 0x718   :  { %2170 = vrcp.f32 %v1293_v27 }
 0x720   :  { %v2167_v15 = vpop.eup %2166 }
 0x721   :  { %v2169_v18 = vpop.eup %2168  ;;  %v1297_v24 = vmul.f32 %v2167_v15, %v2165_v10 }
 0x722   :  { %v1296_v31 = vmul.f32 %v2169_v18, %v2835_v21  ;;  %v2171_v39 = vpop.eup %2170 }
 0x724   :  { %v1298_v32 = vadd.f32 %v1297_v24, %v1296_v31 }
 0x726   :  { %2172 = vtanh.f32 %v1298_v32 }
 0x730   :  { %v2173_v40 = vpop.eup %2172 }
 0x731   :  { %v1300_v41 = vmul.f32 %v2173_v40, %v2171_v39 }
 0x733   :  { %1540 = vst [vmem:[%s2914_s4 + $0x30] sm:$0xff] %v1300_v41  ;;  %1373 = vmatmul.mubr.f32.vlgmr.msra.gmra.mrb[14].mxu0 %v1300_v41  ;;  %1444 = vmatmul.mubr.f32.vlgmr.msra.gmra.mrb[14].mxu1 %v1300_v41 }
 0x806   :  { %v1374_v44 = vpop.f32.mrb[14].mxu0  ;;  %v1445_v47 = vpop.f32.mrb[14].mxu1 }
 0x807   :  { %v1375_v34 = vadd.f32 %v1541_v49, %v1374_v44  ;;  %v1376_v35 = vpop.f32.mrb[15].mxu0  ;;  %v1447_v36 = vpop.f32.mrb[15].mxu1  ;;  %v1446_v4 = vadd.f32 %v1543_v56, %v1445_v47 }
 0x808   :  { %v1377_v38 = vadd.f32 %v1542_v29, %v1376_v35  ;;  %v1448_v54 = vadd.f32 %v1544_v53, %v1447_v36 }
 0x809   :  { %v1545_v50 = vmul.f32 -1.442695, %v1375_v34 }
 0x80a   :  { %v1546_v51 = vmul.f32 -1.442695, %v1377_v38  ;;  %v1547_v57 = vmul.f32 -1.442695, %v1448_v54 }
 0x80b   :  { %2174 = vpow2.f32 %v1545_v50 }
 0x80c   :  { %2176 = vpow2.f32 %v1546_v51 }
 0x80d   :  { %2178 = vpow2.f32 %v1547_v57 }
 0x80e   :  { %2180 = vtanh.f32 %v1446_v4 }
 0x815   :  { %v2175_v22 = vpop.eup %2174 }
 0x816   :  { %v2177_v59 = vpop.eup %2176  ;;  %v1453_v60 = vadd.f32 1.0, %v2175_v22 }
 0x817   :  { %v1459_v61 = vadd.f32 1.0, %v2177_v59  ;;  %v2179_v63 = vpop.eup %2178 }
 0x818   :  { %2182 = vrcp.f32 %v1453_v60  ;;  %v2181_v1 = vpop.eup %2180  ;;  %v1466_v11 = vadd.f32 1.0, %v2179_v63 }
 0x819   :  { %2184 = vrcp.f32 %v1459_v61 }
 0x81a   :  { %2186 = vrcp.f32 %v1466_v11 }
 0x822   :  { %v2183_v2 = vpop.eup %2182 }
 0x823   :  { %v2185_v5 = vpop.eup %2184  ;;  %v1470_v6 = vmul.f32 %v2183_v2, %v2181_v1 }
 0x824   :  { %v1469_v12 = vmul.f32 %v2185_v5, %v1298_v32  ;;  %v2187_v16 = vpop.eup %2186 }
 0x826   :  { %v1471_v13 = vadd.f32 %v1470_v6, %v1469_v12 }
 0x828   :  { %2188 = vtanh.f32 %v1471_v13  ;;  %1477 = vst [vmem:[%s2915_s6] sm:$0xff] %v1471_v13 }
 0x832   :  { %v2189_v19 = vpop.eup %2188 }
 0x833   :  { %v1473_v20 = vmul.f32 %v2189_v19, %v2187_v16 }
 0x835   :  { %1548 = vst [vmem:[%s2914_s4 + $0x38] sm:$0xff] %v1473_v20  ;;  %1476 = vst [vmem:[%s2916_s5] sm:$0xff] %v1473_v20 }

</bundles_post_ra>
